<compile_context>
chip_gen: v6e
topology: v6e:2x2x1
jax: 0.10.0
libtpu: 0.0.40
codegen_flags: <defaults>
</compile_context>

<pallas_src>
import functools

import jax
import jax.numpy as jnp
from jax import lax
from jax.experimental import pallas as pl
from jax.experimental.pallas import tpu as pltpu


def _double_conv_kernel(slab1_ref, w1_ref, t1_ref, w2_ref, t2_ref, o_ref,
                        ypad_ref, *, channel_major):
  """Fused (conv3x3 -> BN -> ReLU) x 2 for a block of Nb images.

  slab1_ref: (Nb*H*W, 9*Cin)      bf16  conv1 im2col slab (built in wrapper)
  w1_ref   : (9*Cin, Cmid)        bf16  conv1 taps, BN1 scale folded in
  w2_ref   : (9*Cmid, Cout)       bf16  conv2 taps, BN2 scale folded in
  t1/t2    : (1, C)               f32   folded BatchNorm shifts
  o_ref    : (Nb, Cout, H*W) if channel_major else (Nb, H*W, Cout)
  ypad_ref : (Nb, H+2, W+2, Cmid) bf16  persistent scratch with 1-px halo
  """
  nb, hp, wp, cmid = ypad_ref.shape
  h, w = hp - 2, wp - 2
  m = nb * h * w
  cout = w2_ref.shape[1]

  # ---- conv1 + BN1 (scale pre-folded) + ReLU: one MXU dot, K = 9*Cin --------
  acc1 = jnp.dot(slab1_ref[...], w1_ref[...],
                 preferred_element_type=jnp.float32)
  y1 = jnp.maximum(acc1 + t1_ref[...], 0.0)                    # (M, Cmid) f32

  # ---- halo scratch: zero only the 1-pixel ring, overwrite the interior -----
  # The ring is zeroed every grid step (not under @pl.when(id==0)) so the
  # result stays correct when the parallel axis is split across TensorCores
  # (a core may never see program_id == 0).  The ring is tiny vs. the interior.
  zrow = jnp.zeros((nb, 1, wp, cmid), jnp.bfloat16)
  zcol = jnp.zeros((nb, hp, 1, cmid), jnp.bfloat16)
  ypad_ref[:, 0:1, :, :] = zrow
  ypad_ref[:, hp - 1:hp, :, :] = zrow
  ypad_ref[:, :, 0:1, :] = zcol
  ypad_ref[:, :, wp - 1:wp, :] = zcol
  ypad_ref[:, 1:h + 1, 1:w + 1, :] = (
      y1.astype(jnp.bfloat16).reshape(nb, h, w, cmid))

  # ---- conv2: im2col slab from scratch slices, one MXU dot, K = 9*Cmid ------
  ypad = ypad_ref[...]
  slab2 = jnp.concatenate(
      [ypad[:, dy:dy + h, dx:dx + w, :].reshape(m, cmid)
       for dy in range(3) for dx in range(3)],
      axis=1)                                                   # (M, 9*Cmid)
  acc2 = jnp.dot(slab2, w2_ref[...], preferred_element_type=jnp.float32)
  y2 = jnp.maximum(acc2 + t2_ref[...], 0.0)                     # (M, Cout) f32

  y2 = y2.reshape(nb, h * w, cout)
  if channel_major:
    # Tiny Cout: per-image transpose so the lane (last) dim of the store is H*W.
    o_ref[...] = jnp.transpose(y2, (0, 2, 1)).astype(o_ref.dtype)
  else:
    # Cout >= 128: (M, Cout) is already lane-dense; skip the XLU transpose.
    o_ref[...] = y2.astype(o_ref.dtype)


def _lane_pad(c):
  return -(-c // 128) * 128


def _step_vmem_bytes(nb, h, w, cin, cmid, cout, out_itemsize):
  """Rough per-grid-step VMEM footprint (lane-padded, with pipeline buffers)."""
  m = nb * h * w
  slab1 = 2 * m * _lane_pad(9 * cin) * 2                  # bf16 in, dbl-buffered
  acc1 = m * _lane_pad(cmid) * 4                           # f32 value
  ypad = nb * (h + 2) * (-(-(w + 2) // 16) * 16) * _lane_pad(cmid) * 2
  slab2 = m * _lane_pad(9 * cmid) * 2                      # bf16 value
  acc2 = m * _lane_pad(cout) * 4                           # f32 value
  outb = 2 * nb * cout * _lane_pad(h * w) * out_itemsize   # dbl-buffered out
  wts = (9 * cin * _lane_pad(cmid) + 9 * cmid * _lane_pad(cout)) * 2 * 2
  # 1.5x safety factor for concat/reshape temporaries and regalloc slack.
  return int(1.5 * (slab1 + acc1 + ypad + slab2 + acc2 + outb)) + wts


def _pick_batch_block(n, h, w, cin, cmid, cout, out_itemsize, budget):
  """Largest divisor of n that fits the VMEM budget, keeping >= 2 grid steps."""
  max_nb = n if n == 1 else n // 2       # >= 2 steps so both v7x TCs get work
  feasible = [d for d in range(1, max_nb + 1)
              if n % d == 0
              and _step_vmem_bytes(d, h, w, cin, cmid, cout,
                                   out_itemsize) <= budget]
  if not feasible:
    return 1
  # Prefer blocks whose flattened M is a multiple of 128 (unmasked vst).
  aligned = [d for d in feasible if (d * h * w) % 128 == 0]
  return max(aligned) if aligned else max(feasible)


def _vmem_budget_and_limit():
  """Returns (soft per-step footprint budget, scoped vmem_limit_bytes or None)."""
  try:
    cap = int(pltpu.get_tpu_info().vmem_capacity_bytes)
    limit = min(cap * 3 // 4, 128 * 1024 * 1024)
    return int(limit * 0.8), limit
  except Exception:
    # Conservative budget under the default scoped VMEM limit.
    return 12 * 1024 * 1024, None


@functools.partial(jax.jit, static_argnames=("out_dtype",))
def double_conv(x_nchw, w1, s1, t1, w2, s2, t2, *, out_dtype=jnp.float32):
  """x_nchw: (N, Cin, H, W); w1/w2: HWIO (3,3,Ci,Co); s/t: folded BN params."""
  n, cin, h, w = x_nchw.shape
  cmid = w1.shape[3]
  cout = w2.shape[3]

  # conv1 im2col in the wrapper: (M, 9*Cin) bf16 slab, K rows ordered (dy,dx,ci)
  # to match the HWIO weight reshape below.
  x = jnp.transpose(x_nchw, (0, 2, 3, 1)).astype(jnp.bfloat16)   # NHWC bf16
  xp = jnp.pad(x, ((0, 0), (1, 1), (1, 1), (0, 0)))
  slab1 = jnp.concatenate(
      [xp[:, dy:dy + h, dx:dx + w, :] for dy in range(3) for dx in range(3)],
      axis=-1).reshape(n * h * w, 9 * cin)

  # Fold BN scales into the weight columns; the kernel does only + shift, ReLU.
  w1_r = (w1.reshape(9 * cin, cmid).astype(jnp.float32)
          * s1.reshape(1, cmid)).astype(jnp.bfloat16)
  w2_r = (w2.reshape(9 * cmid, cout).astype(jnp.float32)
          * s2.reshape(1, cout)).astype(jnp.bfloat16)
  t1 = t1.reshape(1, cmid).astype(jnp.float32)
  t2 = t2.reshape(1, cout).astype(jnp.float32)

  out_itemsize = jnp.dtype(out_dtype).itemsize
  budget, vmem_limit = _vmem_budget_and_limit()
  nb = _pick_batch_block(n, h, w, cin, cmid, cout, out_itemsize, budget)
  grid = (n // nb,)
  m_blk = nb * h * w

  channel_major = cout < 128
  if channel_major:
    out_shape = jax.ShapeDtypeStruct((n, cout, h * w), out_dtype)
    out_spec = pl.BlockSpec((nb, cout, h * w), lambda i: (i, 0, 0))
  else:
    out_shape = jax.ShapeDtypeStruct((n, h * w, cout), out_dtype)
    out_spec = pl.BlockSpec((nb, h * w, cout), lambda i: (i, 0, 0))

  cp_kwargs = dict(dimension_semantics=("parallel",))
  if vmem_limit is not None:
    cp_kwargs["vmem_limit_bytes"] = vmem_limit

  out = pl.pallas_call(
      functools.partial(_double_conv_kernel, channel_major=channel_major),
      out_shape=out_shape,
      grid_spec=pltpu.PrefetchScalarGridSpec(
          num_scalar_prefetch=0,
          grid=grid,
          in_specs=[
              pl.BlockSpec((m_blk, 9 * cin), lambda i: (i, 0)),
              pl.BlockSpec((9 * cin, cmid), lambda i: (0, 0)),
              pl.BlockSpec((1, cmid), lambda i: (0, 0)),
              pl.BlockSpec((9 * cmid, cout), lambda i: (0, 0)),
              pl.BlockSpec((1, cout), lambda i: (0, 0)),
          ],
          out_specs=out_spec,
          scratch_shapes=[pltpu.VMEM((nb, h + 2, w + 2, cmid), jnp.bfloat16)],
      ),
      compiler_params=pltpu.CompilerParams(**cp_kwargs),
  )(slab1, w1_r, t1, w2_r, t2)

  if channel_major:
    return out.reshape(n, cout, h, w)          # free reshape, no HBM transpose
  return jnp.transpose(out.reshape(n, h, w, cout), (0, 3, 1, 2))


def _reference(x_nchw, w1, s1, t1, w2, s2, t2):
  """Pure-JAX reference: bf16 conv operands, f32 accumulation, unfolded BN."""
  dn = ("NHWC", "HWIO", "NHWC")
  x = jnp.transpose(x_nchw, (0, 2, 3, 1)).astype(jnp.bfloat16)
  y = lax.conv_general_dilated(x, w1.astype(jnp.bfloat16), (1, 1), "SAME",
                               dimension_numbers=dn,
                               preferred_element_type=jnp.float32)
  y = jnp.maximum(y * s1.reshape(1, 1, 1, -1) + t1.reshape(1, 1, 1, -1), 0.0)
  y = lax.conv_general_dilated(y.astype(jnp.bfloat16), w2.astype(jnp.bfloat16),
                               (1, 1), "SAME", dimension_numbers=dn,
                               preferred_element_type=jnp.float32)
  y = jnp.maximum(y * s2.reshape(1, 1, 1, -1) + t2.reshape(1, 1, 1, -1), 0.0)
  return jnp.transpose(y, (0, 3, 1, 2))


def _fold_bn(gamma, beta, running_mean, running_var, eps=1e-5):
  scale = gamma / jnp.sqrt(running_var + eps)
  shift = beta - running_mean * scale
  return scale.reshape(1, -1), shift.reshape(1, -1)


if __name__ == "__main__":
  key = jax.random.PRNGKey(0)
  keys = jax.random.split(key, 12)

  N, Cin, H, W = 2, 4, 16, 16
  Cmid = Cout = 8  # mid_channels defaults to out_channels

  x = jax.random.normal(keys[0], (N, Cin, H, W), jnp.float32)

  # Conv weights: PyTorch Conv2d weight is (Cout, Cin, 3, 3) -> HWIO.
  w1_oihw = 0.1 * jax.random.normal(keys[1], (Cmid, Cin, 3, 3), jnp.float32)
  w2_oihw = 0.1 * jax.random.normal(keys[2], (Cout, Cmid, 3, 3), jnp.float32)
  w1 = jnp.transpose(w1_oihw, (2, 3, 1, 0))  # (3,3,Cin,Cmid)
  w2 = jnp.transpose(w2_oihw, (2, 3, 1, 0))  # (3,3,Cmid,Cout)

  # BatchNorm parameters (eval-mode running stats), deterministic.
  g1 = jax.random.uniform(keys[3], (Cmid,), jnp.float32, 0.5, 1.5)
  b1 = 0.1 * jax.random.normal(keys[4], (Cmid,), jnp.float32)
  rm1 = 0.1 * jax.random.normal(keys[5], (Cmid,), jnp.float32)
  rv1 = jax.random.uniform(keys[6], (Cmid,), jnp.float32, 0.5, 1.5)

  g2 = jax.random.uniform(keys[7], (Cout,), jnp.float32, 0.5, 1.5)
  b2 = 0.1 * jax.random.normal(keys[8], (Cout,), jnp.float32)
  rm2 = 0.1 * jax.random.normal(keys[9], (Cout,), jnp.float32)
  rv2 = jax.random.uniform(keys[10], (Cout,), jnp.float32, 0.5, 1.5)

  s1, t1 = _fold_bn(g1, b1, rm1, rv1)
  s2, t2 = _fold_bn(g2, b2, rm2, rv2)

  out = jax.block_until_ready(double_conv(x, w1, s1, t1, w2, s2, t2))
  ref = jax.block_until_ready(_reference(x, w1, s1, t1, w2, s2, t2))

  assert out.shape == (N, Cout, H, W), out.shape
  # Tolerance covers bf16 weight-fold quantization (kernel folds BN scale into
  # bf16 weights; reference applies the scale in f32 after the conv).
  max_err = float(jnp.max(jnp.abs(out - ref)))
  assert max_err < 2.5e-2, max_err

  print("KERNEL_OK")
</pallas_src>

<mosaic_0001>
module attributes {stable_mosaic.version = 11 : i64} {
  func.func @_double_conv_kernel(%arg0: i32, %arg1: memref<256x36xbf16, #tpu.memory_space<vmem>>, %arg2: memref<36x8xbf16, #tpu.memory_space<vmem>>, %arg3: memref<1x8xf32, #tpu.memory_space<vmem>>, %arg4: memref<72x8xbf16, #tpu.memory_space<vmem>>, %arg5: memref<1x8xf32, #tpu.memory_space<vmem>>, %arg6: memref<1x8x256xf32, #tpu.memory_space<vmem>>, %arg7: memref<1x18x18x8xbf16, #tpu.memory_space<vmem>>) attributes {dimension_semantics = [#tpu.dimension_semantics<parallel>], iteration_bounds = array<i64: 2>, scalar_prefetch = 0 : i64, scratch_operands = 1 : i64, tpu.core_type = #tpu.core_type<tc>, window_params = [{transform_indices = @transform_0, window_bounds = array<i64: 256, 36>}, {pipeline_mode = #tpu.pipeline_mode<synchronous>, transform_indices = @transform_1, window_bounds = array<i64: 36, 8>}, {pipeline_mode = #tpu.pipeline_mode<synchronous>, transform_indices = @transform_2, window_bounds = array<i64: 1, 8>}, {pipeline_mode = #tpu.pipeline_mode<synchronous>, transform_indices = @transform_3, window_bounds = array<i64: 72, 8>}, {pipeline_mode = #tpu.pipeline_mode<synchronous>, transform_indices = @transform_4, window_bounds = array<i64: 1, 8>}, {transform_indices = @transform_5, window_bounds = array<i64: 1, 8, 256>}]} {
    %c0 = arith.constant 0 : index
    %c0_0 = arith.constant 0 : index
    %0 = vector.load %arg1[%c0, %c0_0] : memref<256x36xbf16, #tpu.memory_space<vmem>>, vector<256x36xbf16>
    %c0_1 = arith.constant 0 : index
    %c0_2 = arith.constant 0 : index
    %1 = vector.load %arg2[%c0_1, %c0_2] : memref<36x8xbf16, #tpu.memory_space<vmem>>, vector<36x8xbf16>
    %cst = arith.constant dense<0.000000e+00> : vector<256x8xf32>
    %2 = tpu.matmul %0, %1, %cst {dimension_numbers = #tpu.dot_dimension_numbers<[1], [0], [0], [1], [0, 0, 1, 1], [], []>} : vector<256x36xbf16>, vector<36x8xbf16>, vector<256x8xf32> -> vector<256x8xf32>
    %c0_3 = arith.constant 0 : index
    %c0_4 = arith.constant 0 : index
    %3 = vector.load %arg3[%c0_3, %c0_4] : memref<1x8xf32, #tpu.memory_space<vmem>>, vector<1x8xf32>
    %4 = vector.broadcast %3 : vector<1x8xf32> to vector<256x8xf32>
    %5 = arith.addf %2, %4 : vector<256x8xf32>
    %cst_5 = arith.constant 0.000000e+00 : f32
    %6 = vector.broadcast %cst_5 : f32 to vector<256x8xf32>
    %7 = arith.maximumf %5, %6 : vector<256x8xf32>
    %cst_6 = arith.constant 0.000000e+00 : bf16
    %8 = vector.broadcast %cst_6 : bf16 to vector<1x1x18x8xbf16>
    %cst_7 = arith.constant 0.000000e+00 : bf16
    %9 = vector.broadcast %cst_7 : bf16 to vector<1x18x1x8xbf16>
    %c0_8 = arith.constant 0 : index
    %c0_9 = arith.constant 0 : index
    %c0_10 = arith.constant 0 : index
    %c0_11 = arith.constant 0 : index
    %10 = vector.load %arg7[%c0_8, %c0_9, %c0_10, %c0_11] : memref<1x18x18x8xbf16, #tpu.memory_space<vmem>>, vector<1x1x18x8xbf16>
    tpu.vector_store %arg7[%c0_8, %c0_9, %c0_10, %c0_11], %8 {strides = array<i32>} : memref<1x18x18x8xbf16, #tpu.memory_space<vmem>>, vector<1x1x18x8xbf16>,
    %c0_12 = arith.constant 0 : index
    %c17 = arith.constant 17 : index
    %c0_13 = arith.constant 0 : index
    %c0_14 = arith.constant 0 : index
    %11 = vector.load %arg7[%c0_12, %c17, %c0_13, %c0_14] : memref<1x18x18x8xbf16, #tpu.memory_space<vmem>>, vector<1x1x18x8xbf16>
    tpu.vector_store %arg7[%c0_12, %c17, %c0_13, %c0_14], %8 {strides = array<i32>} : memref<1x18x18x8xbf16, #tpu.memory_space<vmem>>, vector<1x1x18x8xbf16>,
    %c0_15 = arith.constant 0 : index
    %c0_16 = arith.constant 0 : index
    %c0_17 = arith.constant 0 : index
    %c0_18 = arith.constant 0 : index
    %12 = vector.load %arg7[%c0_15, %c0_16, %c0_17, %c0_18] : memref<1x18x18x8xbf16, #tpu.memory_space<vmem>>, vector<1x18x1x8xbf16>
    tpu.vector_store %arg7[%c0_15, %c0_16, %c0_17, %c0_18], %9 {strides = array<i32>} : memref<1x18x18x8xbf16, #tpu.memory_space<vmem>>, vector<1x18x1x8xbf16>,
    %c0_19 = arith.constant 0 : index
    %c0_20 = arith.constant 0 : index
    %c17_21 = arith.constant 17 : index
    %c0_22 = arith.constant 0 : index
    %13 = vector.load %arg7[%c0_19, %c0_20, %c17_21, %c0_22] : memref<1x18x18x8xbf16, #tpu.memory_space<vmem>>, vector<1x18x1x8xbf16>
    tpu.vector_store %arg7[%c0_19, %c0_20, %c17_21, %c0_22], %9 {strides = array<i32>} : memref<1x18x18x8xbf16, #tpu.memory_space<vmem>>, vector<1x18x1x8xbf16>,
    %14 = arith.truncf %7 : vector<256x8xf32> to vector<256x8xbf16>
    %15 = vector.shape_cast %14 : vector<256x8xbf16> to vector<1x16x16x8xbf16>
    %c0_23 = arith.constant 0 : index
    %c1 = arith.constant 1 : index
    %c1_24 = arith.constant 1 : index
    %c0_25 = arith.constant 0 : index
    %16 = vector.load %arg7[%c0_23, %c1, %c1_24, %c0_25] : memref<1x18x18x8xbf16, #tpu.memory_space<vmem>>, vector<1x16x16x8xbf16>
    tpu.vector_store %arg7[%c0_23, %c1, %c1_24, %c0_25], %15 {strides = array<i32>} : memref<1x18x18x8xbf16, #tpu.memory_space<vmem>>, vector<1x16x16x8xbf16>,
    %c0_26 = arith.constant 0 : index
    %c0_27 = arith.constant 0 : index
    %c0_28 = arith.constant 0 : index
    %c0_29 = arith.constant 0 : index
    %17 = vector.load %arg7[%c0_26, %c0_27, %c0_28, %c0_29] : memref<1x18x18x8xbf16, #tpu.memory_space<vmem>>, vector<1x18x18x8xbf16>
    %18 = vector.extract_strided_slice %17 {offsets = [0, 0, 0, 0], sizes = [1, 16, 16, 8], strides = [1, 1, 1, 1]} : vector<1x18x18x8xbf16> to vector<1x16x16x8xbf16>
    %19 = vector.shape_cast %18 : vector<1x16x16x8xbf16> to vector<256x8xbf16>
    %20 = vector.extract_strided_slice %17 {offsets = [0, 0, 1, 0], sizes = [1, 16, 16, 8], strides = [1, 1, 1, 1]} : vector<1x18x18x8xbf16> to vector<1x16x16x8xbf16>
    %21 = vector.shape_cast %20 : vector<1x16x16x8xbf16> to vector<256x8xbf16>
    %22 = vector.extract_strided_slice %17 {offsets = [0, 0, 2, 0], sizes = [1, 16, 16, 8], strides = [1, 1, 1, 1]} : vector<1x18x18x8xbf16> to vector<1x16x16x8xbf16>
    %23 = vector.shape_cast %22 : vector<1x16x16x8xbf16> to vector<256x8xbf16>
    %24 = vector.extract_strided_slice %17 {offsets = [0, 1, 0, 0], sizes = [1, 16, 16, 8], strides = [1, 1, 1, 1]} : vector<1x18x18x8xbf16> to vector<1x16x16x8xbf16>
    %25 = vector.shape_cast %24 : vector<1x16x16x8xbf16> to vector<256x8xbf16>
    %26 = vector.extract_strided_slice %17 {offsets = [0, 1, 1, 0], sizes = [1, 16, 16, 8], strides = [1, 1, 1, 1]} : vector<1x18x18x8xbf16> to vector<1x16x16x8xbf16>
    %27 = vector.shape_cast %26 : vector<1x16x16x8xbf16> to vector<256x8xbf16>
    %28 = vector.extract_strided_slice %17 {offsets = [0, 1, 2, 0], sizes = [1, 16, 16, 8], strides = [1, 1, 1, 1]} : vector<1x18x18x8xbf16> to vector<1x16x16x8xbf16>
    %29 = vector.shape_cast %28 : vector<1x16x16x8xbf16> to vector<256x8xbf16>
    %30 = vector.extract_strided_slice %17 {offsets = [0, 2, 0, 0], sizes = [1, 16, 16, 8], strides = [1, 1, 1, 1]} : vector<1x18x18x8xbf16> to vector<1x16x16x8xbf16>
    %31 = vector.shape_cast %30 : vector<1x16x16x8xbf16> to vector<256x8xbf16>
    %32 = vector.extract_strided_slice %17 {offsets = [0, 2, 1, 0], sizes = [1, 16, 16, 8], strides = [1, 1, 1, 1]} : vector<1x18x18x8xbf16> to vector<1x16x16x8xbf16>
    %33 = vector.shape_cast %32 : vector<1x16x16x8xbf16> to vector<256x8xbf16>
    %34 = vector.extract_strided_slice %17 {offsets = [0, 2, 2, 0], sizes = [1, 16, 16, 8], strides = [1, 1, 1, 1]} : vector<1x18x18x8xbf16> to vector<1x16x16x8xbf16>
    %35 = vector.shape_cast %34 : vector<1x16x16x8xbf16> to vector<256x8xbf16>
    %36 = tpu.concatenate %19, %21, %23, %25, %27, %29, %31, %33, %35 in 1 : vector<256x8xbf16>, vector<256x8xbf16>, vector<256x8xbf16>, vector<256x8xbf16>, vector<256x8xbf16>, vector<256x8xbf16>, vector<256x8xbf16>, vector<256x8xbf16>, vector<256x8xbf16> -> vector<256x72xbf16>
    %c0_30 = arith.constant 0 : index
    %c0_31 = arith.constant 0 : index
    %37 = vector.load %arg4[%c0_30, %c0_31] : memref<72x8xbf16, #tpu.memory_space<vmem>>, vector<72x8xbf16>
    %cst_32 = arith.constant dense<0.000000e+00> : vector<256x8xf32>
    %38 = tpu.matmul %36, %37, %cst_32 {dimension_numbers = #tpu.dot_dimension_numbers<[1], [0], [0], [1], [0, 0, 1, 1], [], []>} : vector<256x72xbf16>, vector<72x8xbf16>, vector<256x8xf32> -> vector<256x8xf32>
    %c0_33 = arith.constant 0 : index
    %c0_34 = arith.constant 0 : index
    %39 = vector.load %arg5[%c0_33, %c0_34] : memref<1x8xf32, #tpu.memory_space<vmem>>, vector<1x8xf32>
    %40 = vector.broadcast %39 : vector<1x8xf32> to vector<256x8xf32>
    %41 = arith.addf %38, %40 : vector<256x8xf32>
    %cst_35 = arith.constant 0.000000e+00 : f32
    %42 = vector.broadcast %cst_35 : f32 to vector<256x8xf32>
    %43 = arith.maximumf %41, %42 : vector<256x8xf32>
    %44 = vector.shape_cast %43 : vector<256x8xf32> to vector<1x256x8xf32>
    %45 = tpu.transpose %44, [0, 2, 1] : vector<1x256x8xf32> -> vector<1x8x256xf32>
    %c0_36 = arith.constant 0 : index
    %c0_37 = arith.constant 0 : index
    %c0_38 = arith.constant 0 : index
    %46 = vector.load %arg6[%c0_36, %c0_37, %c0_38] : memref<1x8x256xf32, #tpu.memory_space<vmem>>, vector<1x8x256xf32>
    tpu.vector_store %arg6[%c0_36, %c0_37, %c0_38], %45 {strides = array<i32>} : memref<1x8x256xf32, #tpu.memory_space<vmem>>, vector<1x8x256xf32>,
    return
  }
  func.func @transform_0(%arg0: i32) -> (i32, i32) {
    %c0_i32 = arith.constant 0 : i32
    %c0_i32_0 = arith.constant 0 : i32
    return %arg0, %c0_i32 : i32, i32
  }
  func.func @transform_1(%arg0: i32) -> (i32, i32) {
    %c0_i32 = arith.constant 0 : i32
    %c0_i32_0 = arith.constant 0 : i32
    %c0_i32_1 = arith.constant 0 : i32
    return %c0_i32, %c0_i32_0 : i32, i32
  }
  func.func @transform_2(%arg0: i32) -> (i32, i32) {
    %c0_i32 = arith.constant 0 : i32
    %c0_i32_0 = arith.constant 0 : i32
    %c0_i32_1 = arith.constant 0 : i32
    return %c0_i32, %c0_i32_0 : i32, i32
  }
  func.func @transform_3(%arg0: i32) -> (i32, i32) {
    %c0_i32 = arith.constant 0 : i32
    %c0_i32_0 = arith.constant 0 : i32
    %c0_i32_1 = arith.constant 0 : i32
    return %c0_i32, %c0_i32_0 : i32, i32
  }
  func.func @transform_4(%arg0: i32) -> (i32, i32) {
    %c0_i32 = arith.constant 0 : i32
    %c0_i32_0 = arith.constant 0 : i32
    %c0_i32_1 = arith.constant 0 : i32
    return %c0_i32, %c0_i32_0 : i32, i32
  }
  func.func @transform_5(%arg0: i32) -> (i32, i32, i32) {
    %c0_i32 = arith.constant 0 : i32
    %c0_i32_0 = arith.constant 0 : i32
    %c0_i32_1 = arith.constant 0 : i32
    return %arg0, %c0_i32, %c0_i32_0 : i32, i32, i32
  }
}

</mosaic_0001>

<bundles_post_ra>
// kernel: double_conv.1
= control target key start
LH: loop header
LB: loop body
LE: loop exit
PB: predicated region body
PF: predicated region fallthrough
CT: control target
= control target key end

     0   :  { %s3470_s18 = smov 0   ;;  %s4875_s0 = inlined_call_operand.vmem [shape: bf16[512,36], index: 0, kind: input, shape index: {}]   ;;  %s4876_s1 = inlined_call_operand.vmem [shape: bf16[36,8], index: 1, kind: input, shape index: {}]   ;;  %s4877_s2 = inlined_call_operand.vmem [shape: f32[1,8], index: 2, kind: input, shape index: {}]   ;;  %s4878_s3 = inlined_call_operand.vmem [shape: bf16[72,8], index: 3, kind: input, shape index: {}]   ;;  %s4879_s4 = inlined_call_operand.vmem [shape: f32[1,8], index: 4, kind: input, shape index: {}]   ;;  %s4880_s5 = inlined_call_operand.vmem [shape: f32[2,8,256], index: 5, kind: output, shape index: {}]  }
   0x1 LB: > { %s3476_s19 = sadd.s32 4294967295, %s3429_s18   ;;  %p3036_p0 = scmp.ge.s32.totalorder %s3429_s18, 1  ;;  %s3429_s18 = sphi %s3470_s18, %s15_s18  }
   0x2   : > { %p188_p1 = scmp.lt.s32.totalorder %s3429_s18, 3 }
   0x4   : > { %p189_p2 = pnand %p3036_p0, %p188_p1 }
   0x6   : > { %192 = sbr.rel (%p189_p2) target bundleno = 895 (0x37f), region = 40 }
   0xb   : > { %v3377_v0 = vld [vmem:[%s4876_s1 + $0x10] ss:$0 sps:$4 sm:$0x33]   ;;  %vm416_vm0 = vcmask 1041408   ;;  %v3378_v1 = vld [vmem:[%s4876_s1 + $0x8] sm:$0xff]   ;;  %s3037_s24 = sshll.u32 %s3476_s19, 5 }
   0xc   : > { %3358 = vmatprep.subr.msk.bf16.mxu0 %vm416_vm0, %v3377_v0  ;;  %v418_v2 = vsel %vm416_vm0, %v3377_v0, 0  ;;  %v3379_v3 = vld [vmem:[%s4876_s1] sm:$0xff]   ;;  %p217_p3 = scmp.lt.s32.totalorder %s3037_s24, 63  ;;  %vm367_vm1 = vcmask 293888   ;;  %vm613_vm2 = vcmask 60416   ;;  %vm616_vm3 = vcmask 57344  }
   0xd   : > { %3279 = vmatpush3.bf16.msra.mxu0 %v418_v2  ;;  %v3431_v20 = vmov 0   ;;  %vm623_vm4 = vsmask.f32 256  ;;  %v631_v22 = vld [vmem:[#allocation2 + $0x18] sm:$0x1]  ;;  %vm1757_vm8 = vcmask 1042432  }
   0xe   : > { %3280 = vmatprep.subr.bf16.mxu0 %v3378_v1  ;;  %s4906_s24 = smov (!%p217_p3, %s3037_s24), 63  ;;  %619 = vst.msk [vmem:[#allocation2 + $0xcc] sm:$0xf] %vm613_vm2, %v3431_v20  ;;  %620 = vst.msk [vmem:[#allocation2 + $0xd0] sm:$0xf] %vm613_vm2, %v3431_v20  ;;  %vm1758_vm9 = vcmask 1046532  }
   0xf   : > { %s3038_s27 = sshll.u32 %s4906_s24, 2  ;;  %614 = vst.msk [vmem:[#allocation2] sm:$0xf] %vm613_vm2, %v3431_v20  ;;  %615 = vst.msk [vmem:[#allocation2 + $0x4] sm:$0xf] %vm613_vm2, %v3431_v20  ;;  %s3432_s6 = smov 48  }
  0x10   : > { %s3493_s30 = scalar_lea.vmem %s4875_s0, %s3038_s27  ;;  %617 = vst.msk [vmem:[#allocation2 + $0x8] sm:$0x1] %vm616_vm3, %v3431_v20  ;;  %621 = vst.msk [vmem:[#allocation2 + $0xd4] sm:$0x1] %vm616_vm3, %v3431_v20  ;;  %vm679_vm6 = vsmask.f32 7938 }
  0x11   : > { %3281 = vmatpush3.bf16.msra.mxu0 %v3378_v1  ;;  %v3380_v4 = vld [vmem:[%s3493_s30] sm:$0xff]   ;;  %v3381_v5 = vld [vmem:[%s3493_s30 + $0x8] sm:$0xff]   ;;  %v3382_v6 = vld [vmem:[%s3493_s30 + $0x10] sm:$0xff]   ;;  %vm1322_vm11 = vsmask.f32 3328  ;;  %s3433_s7 = smov 16  }
  0x12   : > { %3282 = vmatprep.subr.bf16.mxu0 %v3379_v3  ;;  %3284 = vmatprep.mubr.msk.bf16.mxu0 %vm367_vm1, %v3380_v4  ;;  %v3383_v7 = vld [vmem:[%s3493_s30 + $0x18] sm:$0xff]   ;;  %v3384_v8 = vld [vmem:[%s3493_s30 + $0x20] sm:$0xff]   ;;  %v3385_v9 = vld [vmem:[%s3493_s30 + $0x28] sm:$0xff]   ;;  %vm1323_vm12 = vsmask.f32 7440  ;;  %s3434_s8 = smov 8  }
  0x13   : > { %v3386_v10 = vld [vmem:[%s3493_s30 + $0x30] sm:$0xff]   ;;  %v3387_v11 = vld [vmem:[%s3493_s30 + $0x38] sm:$0xff]   ;;  %v3388_v12 = vld [vmem:[%s3493_s30 + $0x40] sm:$0xff]   ;;  %vm831_vm15 = vsmask.f32 4368  ;;  %s3435_s11 = smov 24  }
  0x14   : > { %v3389_v13 = vld [vmem:[%s3493_s30 + $0x48] sm:$0xff]   ;;  %v3390_v14 = vld [vmem:[%s3493_s30 + $0x50] sm:$0xff]   ;;  %v3391_v15 = vld [vmem:[%s3493_s30 + $0x58] sm:$0xff]   ;;  %s3436_s12 = smov 40   ;;  %s3437_s13 = smov 64  }
  0x15   : > { %3283 = vmatpush3.bf16.msra.mxu0 %v3379_v3  ;;  %v3392_v16 = vld [vmem:[%s3493_s30 + $0x60] sm:$0xff]   ;;  %v3393_v17 = vld [vmem:[%s3493_s30 + $0x68] sm:$0xff]   ;;  %v3394_v18 = vld [vmem:[%s3493_s30 + $0x70] sm:$0xff]   ;;  %s3438_s14 = smov 32   ;;  %s3439_s15 = smov 56  }
  0x16   : > { %v3395_v19 = vld [vmem:[%s3493_s30 + $0x78] sm:$0xff]   ;;  %vm3532_vm5 = vmand %vm616_vm3, %vm623_vm4  ;;  %v628_v25 = vld [vmem:[#allocation2 + $0xc] sm:$0x1]  ;;  %p222_p4 = scmp.lt.s32.totalorder %s3476_s19, 1 }
  0x17   : > { %v632_v23 = vsel %vm3532_vm5, 0, %v631_v22  ;;  %vm3539_vm7 = vmand %vm616_vm3, %vm679_vm6  ;;  %v629_v26 = vsel %vm3532_vm5, 0, %v628_v25  ;;  %v625_v27 = vld [vmem:[#allocation2] sm:$0x1]  ;;  %v684_v31 = vld [vmem:[#allocation2 + $0x14] sm:$0x1] }
  0x18   : > { %3285 = vmatmul.mubr.msk.bf16.vlgmr.msra.gmra.mxu0 %vm367_vm1, %v3381_v5  ;;  %633 = vst [vmem:[#allocation2 + $0x18] sm:$0x1] %v632_v23  ;;  %630 = vst [vmem:[#allocation2 + $0xc] sm:$0x1] %v629_v26  ;;  %v687_v28 = vld [vmem:[#allocation2 + $0x20] sm:$0x1] }
  0x19   : > { %3288 = vmatprep.mubr.msk.bf16.mxu0 %vm367_vm1, %v3382_v6  ;;  %v626_v29 = vsel %vm3532_vm5, 0, %v625_v27  ;;  %v688_v30 = vsel %vm3539_vm7, 0, %v687_v28  ;;  %v681_v32 = vld [vmem:[#allocation2 + $0x8] sm:$0x1]  ;;  %v685_v33 = vsel %vm3539_vm7, 0, %v684_v31  ;;  %vm3564_vm10 = vmor %vm1757_vm8, %vm1758_vm9  ;;  %vm2407_vm3 = vcmask 130048  }
  0x1a   : > { %627 = vst [vmem:[#allocation2] sm:$0x1] %v626_v29  ;;  %689 = vst [vmem:[#allocation2 + $0x20] sm:$0x1] %v688_v30  ;;  %v676_v34 = vld [vmem:[#allocation2 + $0xcc] sm:$0x1] }
  0x1b   : > { %v682_v35 = vsel %vm3539_vm7, 0, %v681_v32  ;;  %686 = vst [vmem:[#allocation2 + $0x14] sm:$0x1] %v685_v33  ;;  %v637_v36 = vld [vmem:[#allocation2 + $0x30] sm:$0x1]  ;;  %v677_v37 = vsel %vm3532_vm5, 0, %v676_v34  ;;  %vm3572_vm13 = vmor %vm1322_vm11, %vm1323_vm12 }
  0x1c   : > { %683 = vst [vmem:[#allocation2 + $0x8] sm:$0x1] %v682_v35  ;;  %v638_v38 = vsel %vm3532_vm5, 0, %v637_v36  ;;  %678 = vst [vmem:[#allocation2 + $0xcc] sm:$0x1] %v677_v37  ;;  %vm2539_vm8 = vcmask 392192  }
  0x1d   : > { %639 = vst [vmem:[#allocation2 + $0x30] sm:$0x1] %v638_v38  ;;  %v634_v39 = vld [vmem:[#allocation2 + $0x24] sm:$0x1]  ;;  %v693_v47 = vld [vmem:[#allocation2 + $0x38] sm:$0x1]  ;;  %vm3625_vm14 = vmand %vm613_vm2, %vm679_vm6 }
  0x1e   : > { %v635_v40 = vsel %vm3532_vm5, 0, %v634_v39  ;;  %v1269_v42 = vld [vmem:[#allocation2 + $0x4] sm:$0xf]  ;;  %v694_v50 = vsel %vm3539_vm7, 0, %v693_v47  ;;  %v690_v51 = vld [vmem:[#allocation2 + $0x2c] sm:$0x1]  ;;  %vm3635_vm0 = vmor %vm623_vm4, %vm831_vm15 }
  0x1f   : > { %636 = vst [vmem:[#allocation2 + $0x24] sm:$0x1] %v635_v40  ;;  %v1335_v45 = vshll.u32 %v1269_v42, 16  ;;  %v1339_v46 = vshrl.u32 %v1269_v42, 16  ;;  %695 = vst [vmem:[#allocation2 + $0x38] sm:$0x1] %v694_v50 }
  0x20   : > { %3289 = vmatmul.mubr.msk.bf16.gmra.mxu0 %vm367_vm1, %v3383_v7  ;;  %v691_v53 = vsel %vm3539_vm7, 0, %v690_v51  ;;  %v1320_v55 = vld [vmem:[#allocation2 + $0xd0] sm:$0xf]  ;;  %v1762_v56 = vrot.slane %v1269_v42, 5  ;;  %v649_v22 = vld [vmem:[#allocation2 + $0x60] sm:$0x1] }
  0x21   : > { %3292 = vmatprep.mubr.msk.bf16.mxu0 %vm367_vm1, %v3384_v8  ;;  %v1268_v41 = vld [vmem:[#allocation2] sm:$0xf]  ;;  %v1337_v52 = vrot.slane %v1335_v45, 5  ;;  %692 = vst [vmem:[#allocation2 + $0x2c] sm:$0x1] %v691_v53  ;;  %v1341_v60 = vrot.slane %v1339_v46, 4 }
  0x22   : > { %v1326_v43 = vshrl.u32 %v1268_v41, 16  ;;  %v1329_v44 = vshll.u32 %v1268_v41, 16  ;;  %v3109_v61 = vrot.slane %v1268_v41, 9  ;;  %v1764_v62 = vrot.slane %v1762_v56, 4  ;;  %v646_v25 = vld [vmem:[#allocation2 + $0x54] sm:$0x1] }
  0x23   : > { %v1319_v54 = vld [vmem:[#allocation2 + $0xcc] sm:$0xf]  ;;  %v1270_v59 = vld [vmem:[#allocation2 + $0x8] sm:$0x1]  ;;  %v1342_v2 = vor.u32 %v1341_v60, %v1337_v52  ;;  %v650_v23 = vsel %vm3532_vm5, 0, %v649_v22  ;;  %v647_v27 = vsel %vm3532_vm5, 0, %v646_v25 }
  0x24   : > { %v1328_v48 = vrot.slane %v1326_v43, 4  ;;  %v1331_v49 = vrot.slane %v1329_v44, 5  ;;  %v3178_v58 = vcombine.low %v1319_v54, %v1320_v55  ;;  %v1765_v0 = vrot.slane %v1270_v59, 5  ;;  %651 = vst [vmem:[#allocation2 + $0x60] sm:$0x1] %v650_v23  ;;  %s4908_s19 = smov (!%p222_p4, %s3476_s19), 1 }
  0x25   : > { %v1763_v3 = vsel %vm3564_vm10, %v3109_v61, %v1762_v56  ;;  %v1345_v4 = vshll.u32 %v1270_v59, 16  ;;  %v1343_v7 = vrot.slane %v1342_v2, 4  ;;  %v705_v26 = vld [vmem:[#allocation2 + $0x68] sm:$0x1]  ;;  %648 = vst [vmem:[#allocation2 + $0x54] sm:$0x1] %v647_v27 }
  0x26   : > { %v1332_v57 = vor.u32 %v1331_v49, %v1328_v48  ;;  %2286 = vrot.lane.b32.xlu1 %v3178_v58, %s3432_s6  ;;  %v1766_v5 = vsel %vm3564_vm10, %v1764_v62, %v1765_v0  ;;  %v706_v28 = vsel %vm3539_vm7, 0, %v705_v26  ;;  %v702_v29 = vld [vmem:[#allocation2 + $0x5c] sm:$0x1]  ;;  %v655_v31 = vld [vmem:[#allocation2 + $0x78] sm:$0x1]  ;;  %vm2440_vm4 = vcmask 195584  }
  0x27   : > { %v3159_v8 = vcombine.low %v1763_v3, %v1766_v5  ;;  %707 = vst [vmem:[#allocation2 + $0x68] sm:$0x1] %v706_v28  ;;  %v703_v30 = vsel %vm3539_vm7, 0, %v702_v29  ;;  %v656_v32 = vsel %vm3532_vm5, 0, %v655_v31  ;;  %v652_v33 = vld [vmem:[#allocation2 + $0x6c] sm:$0x1] }
  0x28   : > { %3293 = vmatmul.mubr.msk.bf16.gmra.mxu0 %vm367_vm1, %v3385_v9  ;;  %v1333_v1 = vrot.slane %v1332_v57, 4  ;;  %704 = vst [vmem:[#allocation2 + $0x5c] sm:$0x1] %v703_v30  ;;  %657 = vst [vmem:[#allocation2 + $0x78] sm:$0x1] %v656_v32  ;;  %v653_v35 = vsel %vm3532_vm5, 0, %v652_v33 }
  0x29   : > { %3296 = vmatprep.mubr.msk.bf16.mxu0 %vm367_vm1, %v3386_v10  ;;  %v1347_v10 = vrot.slane %v1345_v4, 5  ;;  %v711_v34 = vld [vmem:[#allocation2 + $0x80] sm:$0x1]  ;;  %654 = vst [vmem:[#allocation2 + $0x6c] sm:$0x1] %v653_v35  ;;  %vm2506_vm6 = vcmask 326656  }
  0x2a   : > { %v1338_v9 = vsel %vm3572_vm13, %v1333_v1, %v1337_v52  ;;  %2116 = vrot.lane.b32.xlu1 %v3159_v8, %s3433_s7  ;;  %v712_v36 = vsel %vm3539_vm7, 0, %v711_v34  ;;  %v708_v37 = vld [vmem:[#allocation2 + $0x74] sm:$0x1]  ;;  %v3609_v39 = vld [vmem:[%s4877_s2] ss:$0 sm:$0xff]  ;;  %vm2572_vm9 = vcmask 457728  }
  0x2b   : > { %713 = vst [vmem:[#allocation2 + $0x80] sm:$0x1] %v712_v36  ;;  %v709_v38 = vsel %vm3539_vm7, 0, %v708_v37  ;;  %v661_v40 = vld [vmem:[#allocation2 + $0x90] sm:$0x1]  ;;  %vm2605_vm11 = vcmask 523264  }
  0x2c   : > { %710 = vst [vmem:[#allocation2 + $0x74] sm:$0x1] %v709_v38  ;;  %v662_v41 = vsel %vm3532_vm5, 0, %v661_v40  ;;  %v658_v45 = vld [vmem:[#allocation2 + $0x84] sm:$0x1]  ;;  %vm2681_vm12 = vcmask 588800  }
  0x2d   : > { %663 = vst [vmem:[#allocation2 + $0x90] sm:$0x1] %v662_v41  ;;  %v717_v46 = vld [vmem:[#allocation2 + $0x98] sm:$0x1]  ;;  %v659_v49 = vsel %vm3532_vm5, 0, %v658_v45 }
  0x2e   : > { %v718_v50 = vsel %vm3539_vm7, 0, %v717_v46  ;;  %660 = vst [vmem:[#allocation2 + $0x84] sm:$0x1] %v659_v49  ;;  %v714_v56 = vld [vmem:[#allocation2 + $0x8c] sm:$0x1] }
  0x2f   : > { %719 = vst [vmem:[#allocation2 + $0x98] sm:$0x1] %v718_v50  ;;  %v715_v62 = vsel %vm3539_vm7, 0, %v714_v56  ;;  %v1163_v5 = vld [vmem:[#allocation2 + $0x18] sm:$0xf] }
  0x30   : > { %3297 = vmatmul.mubr.msk.bf16.gmra.mxu0 %vm367_vm1, %v3387_v11  ;;  %v1348_v11 = vsel %vm3572_vm13, %v1343_v7, %v1347_v10  ;;  %716 = vst [vmem:[#allocation2 + $0x8c] sm:$0x1] %v715_v62  ;;  %v1167_v28 = vld [vmem:[#allocation2 + $0x20] sm:$0x1]  ;;  %v1160_v46 = vld [vmem:[#allocation2 + $0x14] sm:$0x1] }
  0x31   : > { %3300 = vmatprep.mubr.msk.bf16.mxu0 %vm367_vm1, %v3388_v12  ;;  %v3143_v12 = vcombine.low %v1338_v9, %v1348_v11 }
  0x33   : > { %2036 = vrot.lane.b32.xlu0 %v3143_v12, %s3434_s8 }
  0x38   : > { %3301 = vmatmul.mubr.msk.bf16.gmra.mxu0 %vm367_vm1, %v3389_v13  ;;  %v643_v13 = vld [vmem:[#allocation2 + $0x48] sm:$0x1] }
  0x39   : > { %3304 = vmatprep.mubr.msk.bf16.mxu0 %vm367_vm1, %v3390_v14  ;;  %v644_v14 = vsel %vm3532_vm5, 0, %v643_v13 }
  0x3a   : > { %645 = vst [vmem:[#allocation2 + $0x48] sm:$0x1] %v644_v14 }
  0x40   : > { %3305 = vmatmul.mubr.msk.bf16.gmra.mxu0 %vm367_vm1, %v3391_v15  ;;  %v640_v15 = vld [vmem:[#allocation2 + $0x3c] sm:$0x1] }
  0x41   : > { %3308 = vmatprep.mubr.msk.bf16.mxu0 %vm367_vm1, %v3392_v16  ;;  %v641_v16 = vsel %vm3532_vm5, 0, %v640_v15  ;;  %v1156_v15 = vld [vmem:[#allocation2 + $0xc] sm:$0xf] }
  0x42   : > { %642 = vst [vmem:[#allocation2 + $0x3c] sm:$0x1] %v641_v16 }
  0x48   : > { %3309 = vmatmul.mubr.msk.bf16.gmra.mxu0 %vm367_vm1, %v3393_v17  ;;  %v699_v17 = vld [vmem:[#allocation2 + $0x50] sm:$0x1] }
  0x49   : > { %3312 = vmatprep.mubr.msk.bf16.mxu0 %vm367_vm1, %v3394_v18  ;;  %v700_v18 = vsel %vm3539_vm7, 0, %v699_v17 }
  0x4a   : > { %701 = vst [vmem:[#allocation2 + $0x50] sm:$0x1] %v700_v18 }
  0x50   : > { %3313 = vmatmul.mubr.msk.bf16.gmra.mxu0 %vm367_vm1, %v3395_v19  ;;  %v696_v19 = vld [vmem:[#allocation2 + $0x44] sm:$0x1]  ;;  %vm2714_vm1 = vcmask 1043456  }
  0x51   : > { %v697_v20 = vsel %vm3539_vm7, 0, %v696_v19 }
  0x52   : > { %698 = vst [vmem:[#allocation2 + $0x44] sm:$0x1] %v697_v20 }
  0xd8   : > { %v3286_v42 = vpop.f32.mrf.mxu0 }
  0xd9   : > { %v463_v43 = vadd.f32 %v3286_v42, %v3609_v39 }
  0xda   : > { %v454_v44 = vpop.f32.mrf.mxu0 }
  0xdb   : > { %v583_v47 = vmax.f32 %v463_v43, 0.0  ;;  %v455_v48 = vadd.f32 %v3609_v39, %v454_v44 }
  0xdc   : > { %v3287_v51 = vpop.f32.mrf.mxu0 }
  0xdd   : > { %v3208_v52 = vpack.c.bf16 %v583_v47, %v583_v47  ;;  %v581_v53 = vmax.f32 %v455_v48, 0.0  ;;  %v466_v54 = vadd.f32 %v3287_v51, %v3609_v39 }
  0xde   : > { %v457_v55 = vpop.f32.mrf.mxu0 }
  0xdf   : > { %v851_v57 = vshrl.u32 %v3208_v52, 16  ;;  %v3206_v58 = vpack.c.bf16 %v581_v53, %v581_v53  ;;  %v584_v59 = vmax.f32 %v466_v54, 0.0  ;;  %v458_v60 = vadd.f32 %v3609_v39, %v457_v55  ;;  %v1177_v54 = vld [vmem:[#allocation2 + $0x30] sm:$0xf] }
  0xe0   : > { %v3290_v61 = vpop.f32.mrf.mxu0  ;;  %v854_v1 = vshll.u32 %v3208_v52, 16 }
  0xe1   : > { %v853_v0 = vrot.slane %v851_v57, 7  ;;  %v834_v2 = vshrl.u32 %v3206_v58, 16  ;;  %v3209_v3 = vpack.c.bf16 %v584_v59, %v584_v59  ;;  %v837_v7 = vshll.u32 %v3206_v58, 16 }
  0xe2   : > { %v582_v8 = vmax.f32 %v458_v60, 0.0  ;;  %v479_v9 = vadd.f32 %v3290_v61, %v3609_v39  ;;  %v470_v10 = vpop.f32.mrf.mxu0 }
  0xe3   : > { %v856_v11 = vor.u32 %v854_v1, %v853_v0  ;;  %v857_v12 = vrot.slane %v853_v0, 4  ;;  %v836_v13 = vrot.slane %v834_v2, 7  ;;  %v859_v14 = vshrl.u32 %v3209_v3, 16 }
  0xe4   : > { %v862_v16 = vshll.u32 %v3209_v3, 16  ;;  %v3207_v17 = vpack.c.bf16 %v582_v8, %v582_v8  ;;  %v587_v18 = vmax.f32 %v479_v9, 0.0  ;;  %v471_v19 = vadd.f32 %v3609_v39, %v470_v10  ;;  %v3291_v20 = vpop.f32.mrf.mxu0 }
  0xe5   : > { %v1164_v22 = vsel %vm3625_vm14, %v856_v11, %v1163_v5  ;;  %v839_v23 = vor.u32 %v837_v7, %v836_v13  ;;  %v840_v25 = vrot.slane %v836_v13, 4  ;;  %v861_v26 = vrot.slane %v859_v14, 7  ;;  %v1170_v5 = vld [vmem:[#allocation2 + $0x24] sm:$0xf] }
  0xe6   : > { %1165 = vst [vmem:[#allocation2 + $0x18] sm:$0xf] %v1164_v22  ;;  %v842_v29 = vshrl.u32 %v3207_v17, 16  ;;  %v845_v30 = vshll.u32 %v3207_v17, 16  ;;  %v3212_v31 = vpack.c.bf16 %v587_v18, %v587_v18  ;;  %v585_v32 = vmax.f32 %v471_v19, 0.0  ;;  %v473_v33 = vpop.f32.mrf.mxu0 }
  0xe7   : > { %v1157_v34 = vsel %vm3625_vm14, %v839_v23, %v1156_v15  ;;  %v864_v35 = vor.u32 %v862_v16, %v861_v26  ;;  %v866_v36 = vrot.slane %v861_v26, 4  ;;  %v482_v37 = vadd.f32 %v3291_v20, %v3609_v39  ;;  %v1181_v15 = vld [vmem:[#allocation2 + $0x38] sm:$0x1] }
  0xe8   : > { %1158 = vst [vmem:[#allocation2 + $0xc] sm:$0xf] %v1157_v34  ;;  %v844_v38 = vrot.slane %v842_v29, 7  ;;  %v885_v40 = vshrl.u32 %v3212_v31, 16  ;;  %v888_v41 = vshll.u32 %v3212_v31, 16  ;;  %v3210_v42 = vpack.c.bf16 %v585_v32, %v585_v32  ;;  %v3294_v43 = vpop.f32.mrf.mxu0 }
  0xe9   : > { %v865_v44 = vsel %vm3635_vm0, %v857_v12, %v864_v35  ;;  %v1168_v45 = vsel %vm3532_vm5, %v866_v36, %v1167_v28  ;;  %v588_v47 = vmax.f32 %v482_v37, 0.0  ;;  %v474_v48 = vadd.f32 %v3609_v39, %v473_v33  ;;  %v1174_v28 = vld [vmem:[#allocation2 + $0x2c] sm:$0x1] }
  0xea   : > { %1166 = vst.msk [vmem:[#allocation2 + $0x1c] sm:$0xf] %vm613_vm2, %v865_v44  ;;  %1169 = vst [vmem:[#allocation2 + $0x20] sm:$0x1] %v1168_v45  ;;  %v847_v49 = vor.u32 %v845_v30, %v844_v38  ;;  %v849_v50 = vrot.slane %v844_v38, 4  ;;  %v887_v51 = vrot.slane %v885_v40, 7  ;;  %v486_v53 = vpop.f32.mrf.mxu0  ;;  %v495_v58 = vadd.f32 %v3294_v43, %v3609_v39 }
  0xeb   : > { %v868_v52 = vshrl.u32 %v3210_v42, 16  ;;  %v871_v55 = vshll.u32 %v3210_v42, 16  ;;  %v3213_v56 = vpack.c.bf16 %v588_v47, %v588_v47  ;;  %v586_v57 = vmax.f32 %v474_v48, 0.0  ;;  %v1191_v45 = vld [vmem:[#allocation2 + $0x48] sm:$0xf] }
  0xec   : > { %v848_v59 = vsel %vm3635_vm0, %v840_v25, %v847_v49  ;;  %v1161_v60 = vsel %vm3532_vm5, %v849_v50, %v1160_v46  ;;  %v890_v61 = vor.u32 %v888_v41, %v887_v51  ;;  %v591_v7 = vmax.f32 %v495_v58, 0.0  ;;  %v3295_v9 = vpop.f32.mrf.mxu0 }
  0xed   : > { %1159 = vst.msk [vmem:[#allocation2 + $0x10] sm:$0xf] %vm613_vm2, %v848_v59  ;;  %1162 = vst [vmem:[#allocation2 + $0x14] sm:$0x1] %v1161_v60  ;;  %v870_v62 = vrot.slane %v868_v52, 7  ;;  %v893_v0 = vshrl.u32 %v3213_v56, 16  ;;  %v3211_v2 = vpack.c.bf16 %v586_v57, %v586_v57  ;;  %v487_v8 = vadd.f32 %v3609_v39, %v486_v53 }
  0xee   : > { %v896_v1 = vshll.u32 %v3213_v56, 16  ;;  %v1178_v3 = vsel %vm3625_vm14, %v890_v61, %v1177_v54  ;;  %v891_v10 = vrot.slane %v887_v51, 4  ;;  %v3216_v17 = vpack.c.bf16 %v591_v7, %v591_v7  ;;  %v3659_v25 = vld [vmem:[#allocation2 + $0x18] sm:$0xf]  ;;  %v489_v33 = vpop.f32.mrf.mxu0  ;;  %v1184_v51 = vld [vmem:[#allocation2 + $0x3c] sm:$0xf] }
  0xef   : > { %1179 = vst [vmem:[#allocation2 + $0x30] sm:$0xf] %v1178_v3  ;;  %v873_v11 = vor.u32 %v871_v55, %v870_v62  ;;  %v895_v12 = vrot.slane %v893_v0, 7  ;;  %v876_v13 = vshrl.u32 %v3211_v2, 16  ;;  %v874_v14 = vrot.slane %v870_v62, 4 }
  0xf0   : > { %v879_v16 = vshll.u32 %v3211_v2, 16  ;;  %v589_v18 = vmax.f32 %v487_v8, 0.0  ;;  %v919_v29 = vshrl.u32 %v3216_v17, 16  ;;  %v922_v30 = vshll.u32 %v3216_v17, 16  ;;  %v3688_v50 = vld [vmem:[#allocation2 + $0xc] sm:$0xf] }
  0xf1   : > { %v1171_v19 = vsel %vm3625_vm14, %v873_v11, %v1170_v5  ;;  %v898_v20 = vor.u32 %v896_v1, %v895_v12  ;;  %v900_v22 = vrot.slane %v895_v12, 4  ;;  %v878_v23 = vrot.slane %v876_v13, 7  ;;  %v3661_v26 = vld [vmem:[#allocation2 + $0x1c] sm:$0xf]  ;;  %v3699_v60 = vld [vmem:[#allocation2 + $0x20] sm:$0x1] }
  0xf2   : > { %1172 = vst [vmem:[#allocation2 + $0x24] sm:$0xf] %v1171_v19  ;;  %v3214_v31 = vpack.c.bf16 %v589_v18, %v589_v18  ;;  %v3665_v32 = vcombine.low %v3659_v25, %v3661_v26  ;;  %v3672_v38 = vrot.slane %v919_v29, 7  ;;  %v498_v46 = vadd.f32 %v3295_v9, %v3609_v39  ;;  %v1195_v18 = vld [vmem:[#allocation2 + $0x50] sm:$0x1] }
  0xf3   : > { %v899_v34 = vsel %vm3635_vm0, %v891_v10, %v898_v20  ;;  %v1182_v35 = vsel %vm3532_vm5, %v900_v22, %v1181_v15  ;;  %v881_v36 = vor.u32 %v879_v16, %v878_v23  ;;  %v883_v37 = vrot.slane %v878_v23, 4  ;;  %v1188_v19 = vld [vmem:[#allocation2 + $0x44] sm:$0x1] }
  0xf4   : > { %1180 = vst.msk [vmem:[#allocation2 + $0x34] sm:$0xf] %vm613_vm2, %v899_v34  ;;  %1183 = vst [vmem:[#allocation2 + $0x38] sm:$0x1] %v1182_v35  ;;  %v902_v40 = vshrl.u32 %v3214_v31, 16  ;;  %v905_v41 = vshll.u32 %v3214_v31, 16  ;;  %2256 = vrot.lane.b32.xlu0 %v3665_v32, %s3432_s6  ;;  %2153 = vrot.lane.b32.xlu1 %v3665_v32, %s3435_s11  ;;  %v490_v47 = vadd.f32 %v3609_v39, %v489_v33 }
  0xf5   : > { %v3678_v42 = vld [vmem:[#allocation2 + $0x10] sm:$0xf]  ;;  %v882_v43 = vsel %vm3635_vm0, %v874_v14, %v881_v36  ;;  %v1175_v44 = vsel %vm3532_vm5, %v883_v37, %v1174_v28  ;;  %v924_v48 = vor.u32 %v922_v30, %v3672_v38  ;;  %v592_v52 = vmax.f32 %v498_v46, 0.0  ;;  %v3707_v9 = vld [vmem:[#allocation2 + $0x14] sm:$0x1]  ;;  %v3298_v37 = vpop.f32.mrf.mxu0 }
  0xf6   : > { %1173 = vst.msk [vmem:[#allocation2 + $0x28] sm:$0xf] %vm613_vm2, %v882_v43  ;;  %1176 = vst [vmem:[#allocation2 + $0x2c] sm:$0x1] %v1175_v44  ;;  %v904_v49 = vrot.slane %v902_v40, 7  ;;  %v590_v53 = vmax.f32 %v490_v47, 0.0  ;;  %v3692_v54 = vcombine.low %v3688_v50, %v3678_v42 }
  0xf7   : > { %v1192_v55 = vsel %vm3625_vm14, %v924_v48, %v1191_v45  ;;  %v1374_v57 = vshrl.u32 %v3659_v25, 16  ;;  %v3217_v58 = vpack.c.bf16 %v592_v52, %v592_v52  ;;  %v1776_v61 = vrot.slane %v3661_v26, 5 }
  0xf8   : > { %v907_v56 = vor.u32 %v905_v41, %v904_v49  ;;  %1193 = vst [vmem:[#allocation2 + $0x48] sm:$0xf] %v1192_v55  ;;  %v3215_v59 = vpack.c.bf16 %v590_v53, %v590_v53  ;;  %2151 = vrot.lane.b32.xlu0 %v3692_v54, %s3435_s11  ;;  %v1377_v0 = vshll.u32 %v3659_v25, 16  ;;  %v1387_v1 = vshrl.u32 %v3661_v26, 16  ;;  %v3740_v55 = vld [vmem:[#allocation2 + $0x30] sm:$0xf] }
  0xf9   : > { %v1769_v2 = vrot.slane %v3678_v42, 5  ;;  %v927_v3 = vshrl.u32 %v3217_v58, 16  ;;  %v930_v5 = vshll.u32 %v3217_v58, 16  ;;  %v3111_v10 = vrot.slane %v3659_v25, 9  ;;  %v502_v58 = vpop.f32.mrf.mxu0 }
  0xfa   : > { %v1185_v62 = vsel %vm3625_vm14, %v907_v56, %v1184_v51  ;;  %v910_v7 = vshrl.u32 %v3215_v59, 16  ;;  %v913_v8 = vshll.u32 %v3215_v59, 16  ;;  %v1778_v11 = vrot.slane %v1776_v61, 4 }
  0xfb   : > { %1186 = vst [vmem:[#allocation2 + $0x3c] sm:$0xf] %v1185_v62  ;;  %v1779_v12 = vrot.slane %v3699_v60, 5  ;;  %v1771_v13 = vrot.slane %v1769_v2, 4  ;;  %v925_v14 = vrot.slane %v3672_v38, 4  ;;  %v908_v15 = vrot.slane %v904_v49, 4 }
  0xfc   : > { %v929_v16 = vrot.slane %v927_v3, 7  ;;  %v912_v17 = vrot.slane %v910_v7, 7  ;;  %v1777_v20 = vsel %vm3564_vm10, %v3111_v10, %v1776_v61  ;;  %v3110_v23 = vrot.slane %v3688_v50, 9  ;;  %v3732_v44 = vld [vmem:[#allocation2 + $0x34] sm:$0xf] }
  0xfd   : > { %v1780_v22 = vsel %vm3564_vm10, %v1778_v11, %v1779_v12  ;;  %v1772_v25 = vrot.slane %v3707_v9, 5  ;;  %v1376_v35 = vrot.slane %v1374_v57, 4  ;;  %v1379_v36 = vrot.slane %v1377_v0, 5  ;;  %v3299_v12 = vpop.f32.mrf.mxu0 }
  0xfe   : > { %v932_v28 = vor.u32 %v930_v5, %v929_v16  ;;  %v934_v29 = vrot.slane %v929_v16, 4  ;;  %v915_v30 = vor.u32 %v913_v8, %v912_v17  ;;  %v917_v31 = vrot.slane %v912_v17, 4 }
  0xff   : > { %v3161_v33 = vcombine.low %v1777_v20, %v1780_v22  ;;  %v1773_v34 = vsel %vm3564_vm10, %v1771_v13, %v1772_v25  ;;  %v1380_v45 = vor.u32 %v1379_v36, %v1376_v35  ;;  %v1383_v46 = vshll.u32 %v3661_v26, 16 }
 0x100   : > { %v933_v38 = vsel %vm3635_vm0, %v925_v14, %v932_v28  ;;  %v1196_v40 = vsel %vm3532_vm5, %v934_v29, %v1195_v18  ;;  %v916_v41 = vsel %vm3635_vm0, %v908_v15, %v915_v30  ;;  %v1189_v43 = vsel %vm3532_vm5, %v917_v31, %v1188_v19  ;;  %v505_v30 = vpop.f32.mrf.mxu0 }
 0x101   : > { %1194 = vst.msk [vmem:[#allocation2 + $0x4c] sm:$0xf] %vm613_vm2, %v933_v38  ;;  %1197 = vst [vmem:[#allocation2 + $0x50] sm:$0x1] %v1196_v40  ;;  %2223 = vrot.lane.b32.xlu1 %v3161_v33, %s3436_s12  ;;  %2326 = vrot.lane.b32.xlu0 %v3161_v33, %s3437_s13  ;;  %v1389_v47 = vrot.slane %v1387_v1, 4  ;;  %v1350_v48 = vshrl.u32 %v3688_v50, 16  ;;  %v1770_v51 = vsel %vm3564_vm10, %v3110_v23, %v1769_v2 }
 0x102   : > { %1187 = vst.msk [vmem:[#allocation2 + $0x40] sm:$0xf] %vm613_vm2, %v916_v41  ;;  %1190 = vst [vmem:[#allocation2 + $0x44] sm:$0x1] %v1189_v43  ;;  %v1353_v49 = vshll.u32 %v3688_v50, 16  ;;  %v1393_v52 = vshll.u32 %v3699_v60, 16  ;;  %v3160_v53 = vcombine.low %v1770_v51, %v1773_v34  ;;  %v511_v57 = vadd.f32 %v3298_v37, %v3609_v39 }
 0x103   : > { %v1385_v56 = vrot.slane %v1383_v46, 5  ;;  %v1363_v59 = vshrl.u32 %v3678_v42, 16  ;;  %v3746_v26 = vcombine.low %v3740_v55, %v3732_v44  ;;  %v1381_v50 = vrot.slane %v1380_v45, 4  ;;  %v3751_v1 = vld [vmem:[#allocation2 + $0x38] sm:$0x1] }
 0x104   : > { %v595_v60 = vmax.f32 %v511_v57, 0.0  ;;  %v503_v62 = vadd.f32 %v3609_v39, %v502_v58  ;;  %v1395_v0 = vrot.slane %v1393_v52, 5  ;;  %v1790_v2 = vrot.slane %v3732_v44, 5  ;;  %v3776_v40 = vld [vmem:[#allocation2 + $0x28] sm:$0xf] }
 0x105   : > { %2118 = vrot.lane.b32.xlu1 %v3160_v53, %s3433_s7  ;;  %2120 = vrot.lane.b32.xlu0 %v3161_v33, %s3433_s7  ;;  %v1390_v61 = vor.u32 %v1389_v47, %v1385_v56  ;;  %v1352_v3 = vrot.slane %v1350_v48, 4  ;;  %v1355_v5 = vrot.slane %v1353_v49, 5  ;;  %v1359_v11 = vshll.u32 %v3678_v42, 16  ;;  %v1205_v33 = vld [vmem:[#allocation2 + $0x60] sm:$0xf] }
 0x106   : > { %v3220_v8 = vpack.c.bf16 %v595_v60, %v595_v60  ;;  %v593_v10 = vmax.f32 %v503_v62, 0.0  ;;  %v3113_v13 = vrot.slane %v3740_v55, 9  ;;  %v1365_v14 = vrot.slane %v1363_v59, 4  ;;  %v3785_v49 = vld [vmem:[#allocation2 + $0x24] sm:$0xf] }
 0x107   : > { %v1391_v7 = vrot.slane %v1390_v61, 4  ;;  %v1793_v18 = vrot.slane %v3751_v1, 5  ;;  %v1386_v19 = vsel %vm3572_vm13, %v1381_v50, %v1385_v56  ;;  %v1792_v42 = vrot.slane %v1790_v2, 4  ;;  %v3792_v59 = vld [vmem:[#allocation2 + $0x2c] sm:$0x1] }
 0x108   : > { %v953_v16 = vshrl.u32 %v3220_v8, 16  ;;  %v956_v17 = vshll.u32 %v3220_v8, 16  ;;  %v3218_v20 = vpack.c.bf16 %v593_v10, %v593_v10  ;;  %v3764_v22 = vrot.slane %v1359_v11, 5 }
 0x109   : > { %2157 = vrot.lane.b32.xlu1 %v3746_v26, %s3435_s11  ;;  %2221 = vrot.lane.b32.xlu0 %v3160_v53, %s3436_s12  ;;  %v1396_v15 = vsel %vm3572_vm13, %v1391_v7, %v1395_v0  ;;  %v1356_v28 = vor.u32 %v1355_v5, %v1352_v3  ;;  %v514_v29 = vadd.f32 %v3299_v12, %v3609_v39  ;;  %v1422_v31 = vshrl.u32 %v3740_v55, 16  ;;  %v1198_v53 = vld [vmem:[#allocation2 + $0x54] sm:$0xf] }
 0x10a   : > { %v3145_v23 = vcombine.low %v1386_v19, %v1396_v15  ;;  %v3766_v25 = vrot.slane %v953_v16, 7  ;;  %v936_v34 = vshrl.u32 %v3218_v20, 16  ;;  %v939_v35 = vshll.u32 %v3218_v20, 16 }
 0x10b   : > { %v1366_v36 = vor.u32 %v1365_v14, %v3764_v22  ;;  %v1425_v37 = vshll.u32 %v3740_v55, 16  ;;  %v1435_v38 = vshrl.u32 %v3732_v44, 16  ;;  %v596_v43 = vmax.f32 %v514_v29, 0.0  ;;  %v1209_v14 = vld [vmem:[#allocation2 + $0x68] sm:$0x1] }
 0x10c   : > { %v958_v41 = vor.u32 %v956_v17, %v3766_v25  ;;  %v1794_v45 = vsel %vm3564_vm10, %v1792_v42, %v1793_v18  ;;  %v3781_v46 = vrot.slane %v936_v34, 7  ;;  %v1369_v47 = vshll.u32 %v3707_v9, 16 }
 0x10d   : > { %2188 = vrot.lane.b32.xlu1 %v3145_v23, %s3438_s14  ;;  %2260 = vrot.lane.b32.xlu0 %v3746_v26, %s3432_s6  ;;  %v506_v48 = vadd.f32 %v3609_v39, %v505_v30  ;;  %v1791_v52 = vsel %vm3564_vm10, %v3113_v13, %v1790_v2  ;;  %v1357_v55 = vrot.slane %v1356_v28, 4  ;;  %v3221_v56 = vpack.c.bf16 %v596_v43, %v596_v43 }
 0x10e   : > { %v1206_v51 = vsel %vm3625_vm14, %v958_v41, %v1205_v33  ;;  %v941_v57 = vor.u32 %v939_v35, %v3781_v46  ;;  %v1367_v58 = vrot.slane %v1366_v36, 4  ;;  %v1783_v9 = vrot.slane %v3776_v40, 5  ;;  %v1202_v35 = vld [vmem:[#allocation2 + $0x5c] sm:$0x1] }
 0x10f   : > { %1207 = vst [vmem:[#allocation2 + $0x60] sm:$0xf] %v1206_v51  ;;  %v594_v50 = vmax.f32 %v506_v48, 0.0  ;;  %v3799_v61 = vcombine.low %v3785_v49, %v3776_v40  ;;  %v3801_v60 = vcombine.low %v1791_v52, %v1794_v45  ;;  %v961_v62 = vshrl.u32 %v3221_v56, 16 }
 0x110   : > { %v964_v0 = vshll.u32 %v3221_v56, 16  ;;  %v1199_v2 = vsel %vm3625_vm14, %v941_v57, %v1198_v53  ;;  %v1371_v3 = vrot.slane %v1369_v47, 5  ;;  %v3112_v5 = vrot.slane %v3785_v49, 9 }
 0x111   : > { %2040 = vrot.lane.b32.xlu1 %v3145_v23, %s3434_s8  ;;  %2291 = vrot.lane.b32.xlu0 %v3145_v23, %s3439_s15  ;;  %v3219_v7 = vpack.c.bf16 %v594_v50, %v594_v50  ;;  %v959_v8 = vrot.slane %v3766_v25, 4  ;;  %1200 = vst [vmem:[#allocation2 + $0x54] sm:$0xf] %v1199_v2  ;;  %v1362_v10 = vsel %vm3572_vm13, %v1357_v55, %v3764_v22  ;;  %v963_v11 = vrot.slane %v961_v62, 7  ;;  %v3302_v22 = vpop.f32.mrf.mxu0  ;;  %v3849_v50 = vld [vmem:[#allocation2 + $0x4c] sm:$0xf] }
 0x112   : > { %v1786_v12 = vrot.slane %v3792_v59, 5  ;;  %v1372_v13 = vsel %vm3572_vm13, %v1367_v58, %v1371_v3  ;;  %v1785_v15 = vrot.slane %v1783_v9, 4  ;;  %v1431_v42 = vshll.u32 %v3732_v44, 16 }
 0x113   : > { %v944_v16 = vshrl.u32 %v3219_v7, 16  ;;  %v947_v17 = vshll.u32 %v3219_v7, 16  ;;  %v966_v18 = vor.u32 %v964_v0, %v963_v11  ;;  %v968_v19 = vrot.slane %v963_v11, 4  ;;  %v518_v43 = vpop.f32.mrf.mxu0 }
 0x114   : > { %v1437_v20 = vrot.slane %v1435_v38, 4  ;;  %v942_v23 = vrot.slane %v3781_v46, 4  ;;  %v1424_v28 = vrot.slane %v1422_v31, 4  ;;  %v1427_v29 = vrot.slane %v1425_v37, 5 }
 0x115   : > { %2258 = vrot.lane.b32.xlu1 %v3799_v61, %s3432_s6  ;;  %2155 = vrot.lane.b32.xlu0 %v3799_v61, %s3435_s11  ;;  %v946_v25 = vrot.slane %v944_v16, 7  ;;  %v3144_v30 = vcombine.low %v1362_v10, %v1372_v13  ;;  %v967_v33 = vsel %vm3635_vm0, %v959_v8, %v966_v18  ;;  %v1210_v34 = vsel %vm3532_vm5, %v968_v19, %v1209_v14  ;;  %v3303_v58 = vpop.f32.mrf.mxu0 }
 0x116   : > { %v1433_v36 = vrot.slane %v1431_v42, 5  ;;  %1208 = vst.msk [vmem:[#allocation2 + $0x64] sm:$0xf] %vm613_vm2, %v967_v33  ;;  %1211 = vst [vmem:[#allocation2 + $0x68] sm:$0x1] %v1210_v34  ;;  %v1787_v44 = vsel %vm3564_vm10, %v1785_v15, %v1786_v12  ;;  %v1784_v31 = vsel %vm3564_vm10, %v3112_v5, %v1783_v9  ;;  %v1428_v47 = vor.u32 %v1427_v29, %v1424_v28 }
 0x117   : > { %v949_v38 = vor.u32 %v947_v17, %v946_v25  ;;  %v951_v41 = vrot.slane %v946_v25, 4  ;;  %v1441_v48 = vshll.u32 %v3751_v1, 16  ;;  %v3836_v51 = vcombine.low %v1784_v31, %v1787_v44  ;;  %v3846_v1 = vld [vmem:[#allocation2 + $0x48] sm:$0xf]  ;;  %v521_v14 = vpop.f32.mrf.mxu0  ;;  %v1219_v28 = vld [vmem:[#allocation2 + $0x78] sm:$0xf] }
 0x118   : > { %v1438_v37 = vor.u32 %v1437_v20, %v1433_v36  ;;  %v1411_v52 = vshrl.u32 %v3776_v40, 16  ;;  %v1407_v55 = vshll.u32 %v3776_v40, 16  ;;  %v527_v56 = vadd.f32 %v3302_v22, %v3609_v39 }
 0x119   : > { %2227 = vrot.lane.b32.xlu1 %v3801_v60, %s3436_s12  ;;  %2038 = vrot.lane.b32.xlu0 %v3144_v30, %s3434_s8  ;;  %v950_v45 = vsel %vm3635_vm0, %v942_v23, %v949_v38  ;;  %v1203_v46 = vsel %vm3532_vm5, %v951_v41, %v1202_v35  ;;  %v1398_v57 = vshrl.u32 %v3785_v49, 16  ;;  %v1401_v9 = vshll.u32 %v3785_v49, 16  ;;  %v1212_v38 = vld [vmem:[#allocation2 + $0x6c] sm:$0xf] }
 0x11a   : > { %1201 = vst.msk [vmem:[#allocation2 + $0x58] sm:$0xf] %vm613_vm2, %v950_v45  ;;  %1204 = vst [vmem:[#allocation2 + $0x5c] sm:$0x1] %v1203_v46  ;;  %v1439_v53 = vrot.slane %v1438_v37, 4  ;;  %v1429_v62 = vrot.slane %v1428_v47, 4  ;;  %v3853_v40 = vcombine.low %v3846_v1, %v3849_v50  ;;  %v519_v3 = vadd.f32 %v3609_v39, %v518_v43 }
 0x11b   : > { %v1443_v0 = vrot.slane %v1441_v48, 5  ;;  %v599_v2 = vmax.f32 %v527_v56, 0.0  ;;  %v530_v5 = vadd.f32 %v3303_v58, %v3609_v39  ;;  %v3859_v8 = vrot.slane %v1407_v55, 5  ;;  %v1223_v45 = vld [vmem:[#allocation2 + $0x80] sm:$0x1] }
 0x11c   : > { %v1413_v10 = vrot.slane %v1411_v52, 4  ;;  %v1400_v11 = vrot.slane %v1398_v57, 4  ;;  %v597_v12 = vmax.f32 %v519_v3, 0.0  ;;  %v1434_v15 = vsel %vm3572_vm13, %v1429_v62, %v1433_v36  ;;  %v3876_v46 = vld [vmem:[#allocation2 + $0x3c] sm:$0xf] }
 0x11d   : > { %2122 = vrot.lane.b32.xlu1 %v3836_v51, %s3433_s7  ;;  %2186 = vrot.lane.b32.xlu0 %v3144_v30, %s3438_s14  ;;  %v1444_v7 = vsel %vm3572_vm13, %v1439_v53, %v1443_v0  ;;  %v3224_v49 = vpack.c.bf16 %v599_v2, %v599_v2  ;;  %v600_v13 = vmax.f32 %v530_v5, 0.0  ;;  %v1403_v16 = vrot.slane %v1401_v9, 5  ;;  %v3878_v47 = vld [vmem:[#allocation2 + $0x40] sm:$0xf] }
 0x11e   : > { %v3867_v19 = vcombine.low %v1434_v15, %v1444_v7  ;;  %v3222_v42 = vpack.c.bf16 %v597_v12, %v597_v12  ;;  %v1414_v22 = vor.u32 %v1413_v10, %v3859_v8  ;;  %v522_v25 = vadd.f32 %v3609_v39, %v521_v14  ;;  %v3306_v7 = vpop.f32.mrf.mxu0  ;;  %v1216_v15 = vld [vmem:[#allocation2 + $0x74] sm:$0x1] }
 0x11f   : > { %v987_v17 = vshrl.u32 %v3224_v49, 16  ;;  %v990_v18 = vshll.u32 %v3224_v49, 16  ;;  %v3225_v20 = vpack.c.bf16 %v600_v13, %v600_v13  ;;  %v1404_v35 = vor.u32 %v1403_v16, %v1400_v11  ;;  %v3899_v49 = vld [vmem:[#allocation2 + $0x50] sm:$0x1] }
 0x120   : > { %v970_v29 = vshrl.u32 %v3222_v42, 16  ;;  %v973_v30 = vshll.u32 %v3222_v42, 16  ;;  %v1417_v36 = vshll.u32 %v3792_v59, 16  ;;  %v598_v41 = vmax.f32 %v522_v25, 0.0 }
 0x121   : > { %2161 = vrot.lane.b32.xlu1 %v3853_v40, %s3435_s11  ;;  %2330 = vrot.lane.b32.xlu0 %v3801_v60, %s3437_s13  ;;  %v989_v23 = vrot.slane %v987_v17, 7  ;;  %v995_v33 = vshrl.u32 %v3225_v20, 16  ;;  %v998_v34 = vshll.u32 %v3225_v20, 16  ;;  %v3888_v59 = vcombine.low %v3876_v46, %v3878_v47 }
 0x122   : > { %v972_v37 = vrot.slane %v970_v29, 7  ;;  %v3223_v52 = vpack.c.bf16 %v598_v41, %v598_v41  ;;  %v1405_v57 = vrot.slane %v1404_v35, 4  ;;  %v1419_v58 = vrot.slane %v1417_v36, 5 }
 0x123   : > { %v992_v44 = vor.u32 %v990_v18, %v989_v23  ;;  %v993_v31 = vrot.slane %v989_v23, 4  ;;  %v997_v43 = vrot.slane %v995_v33, 7  ;;  %v1804_v0 = vrot.slane %v3849_v50, 5  ;;  %v3912_v18 = vld [vmem:[#allocation2 + $0x44] sm:$0x1] }
 0x124   : > { %v975_v53 = vor.u32 %v973_v30, %v972_v37  ;;  %v978_v9 = vshrl.u32 %v3223_v52, 16  ;;  %v981_v62 = vshll.u32 %v3223_v52, 16  ;;  %v976_v11 = vrot.slane %v972_v37, 4 }
 0x125   : > { %2192 = vrot.lane.b32.xlu1 %v3867_v19, %s3438_s14  ;;  %2124 = vrot.lane.b32.xlu0 %v3801_v60, %s3433_s7  ;;  %v1415_v60 = vrot.slane %v1414_v22, 4  ;;  %v1220_v48 = vsel %vm3625_vm14, %v992_v44, %v1219_v28  ;;  %v1000_v55 = vor.u32 %v998_v34, %v997_v43  ;;  %v1002_v56 = vrot.slane %v997_v43, 4  ;;  %v534_v28 = vpop.f32.mrf.mxu0 }
 0x126   : > { %1221 = vst [vmem:[#allocation2 + $0x78] sm:$0xf] %v1220_v48  ;;  %v1213_v2 = vsel %vm3625_vm14, %v975_v53, %v1212_v38  ;;  %v980_v12 = vrot.slane %v978_v9, 7  ;;  %v1470_v13 = vshrl.u32 %v3846_v1, 16  ;;  %v1797_v14 = vrot.slane %v3878_v47, 5 }
 0x127   : > { %v1001_v3 = vsel %vm3635_vm0, %v993_v31, %v1000_v55  ;;  %v1224_v5 = vsel %vm3532_vm5, %v1002_v56, %v1223_v45  ;;  %v1420_v10 = vsel %vm3572_vm13, %v1415_v60, %v1419_v58  ;;  %1214 = vst [vmem:[#allocation2 + $0x6c] sm:$0xf] %v1213_v2  ;;  %v1473_v16 = vshll.u32 %v3846_v1, 16  ;;  %v3307_v31 = vpop.f32.mrf.mxu0 }
 0x128   : > { %1222 = vst.msk [vmem:[#allocation2 + $0x7c] sm:$0xf] %vm613_vm2, %v1001_v3  ;;  %1225 = vst [vmem:[#allocation2 + $0x80] sm:$0x1] %v1224_v5  ;;  %v1410_v17 = vsel %vm3572_vm13, %v1405_v57, %v3859_v8  ;;  %v983_v42 = vor.u32 %v981_v62, %v980_v12  ;;  %v985_v20 = vrot.slane %v980_v12, 4  ;;  %v3115_v23 = vrot.slane %v3846_v1, 9 }
 0x129   : > { %2044 = vrot.lane.b32.xlu1 %v3867_v19, %s3434_s8  ;;  %2328 = vrot.lane.b32.xlu0 %v3836_v51, %s3437_s13  ;;  %v3914_v22 = vcombine.low %v1410_v17, %v1420_v10  ;;  %v1806_v25 = vrot.slane %v1804_v0, 4  ;;  %v1483_v29 = vshrl.u32 %v3849_v50, 16  ;;  %v1479_v33 = vshll.u32 %v3849_v50, 16 }
 0x12a   : > { %v984_v30 = vsel %vm3635_vm0, %v976_v11, %v983_v42  ;;  %v1217_v8 = vsel %vm3532_vm5, %v985_v20, %v1216_v15  ;;  %v3114_v1 = vrot.slane %v3876_v46, 9  ;;  %v1799_v34 = vrot.slane %v1797_v14, 4  ;;  %v3961_v11 = vld [vmem:[#allocation2 + $0x60] sm:$0xf]  ;;  %v1233_v42 = vld [vmem:[#allocation2 + $0x90] sm:$0xf] }
 0x12b   : > { %v1800_v35 = vrot.slane %v3912_v18, 5  ;;  %1215 = vst.msk [vmem:[#allocation2 + $0x70] sm:$0xf] %vm613_vm2, %v984_v30  ;;  %1218 = vst [vmem:[#allocation2 + $0x74] sm:$0x1] %v1217_v8  ;;  %v1472_v36 = vrot.slane %v1470_v13, 4  ;;  %v543_v38 = vadd.f32 %v3306_v7, %v3609_v39  ;;  %v1805_v50 = vsel %vm3564_vm10, %v3115_v23, %v1804_v0  ;;  %v537_v0 = vpop.f32.mrf.mxu0 }
 0x12c   : > { %v1475_v44 = vrot.slane %v1473_v16, 5  ;;  %v3936_v37 = vrot.slane %v1479_v33, 5  ;;  %v1485_v43 = vrot.slane %v1483_v29, 4  ;;  %v535_v60 = vadd.f32 %v3609_v39, %v534_v28 }
 0x12d   : > { %2262 = vrot.lane.b32.xlu1 %v3888_v59, %s3432_s6  ;;  %2225 = vrot.lane.b32.xlu0 %v3836_v51, %s3436_s12  ;;  %v1807_v51 = vrot.slane %v3899_v49, 5  ;;  %v603_v45 = vmax.f32 %v543_v38, 0.0  ;;  %v1798_v48 = vsel %vm3564_vm10, %v3114_v1, %v1797_v14  ;;  %v1801_v52 = vsel %vm3564_vm10, %v1799_v34, %v1800_v35 }
 0x12e   : > { %v1476_v53 = vor.u32 %v1475_v44, %v1472_v36  ;;  %v601_v56 = vmax.f32 %v535_v60, 0.0  ;;  %v546_v57 = vadd.f32 %v3307_v31, %v3609_v39  ;;  %v1446_v58 = vshrl.u32 %v3876_v46, 16  ;;  %v1226_v36 = vld [vmem:[#allocation2 + $0x84] sm:$0xf] }
 0x12f   : > { %v1808_v41 = vsel %vm3564_vm10, %v1806_v25, %v1807_v51  ;;  %v3228_v55 = vpack.c.bf16 %v603_v45, %v603_v45  ;;  %v1489_v62 = vshll.u32 %v3899_v49, 16  ;;  %v1486_v2 = vor.u32 %v1485_v43, %v3936_v37  ;;  %v3963_v49 = vld [vmem:[#allocation2 + $0x64] sm:$0xf]  ;;  %v1237_v45 = vld [vmem:[#allocation2 + $0x98] sm:$0x1] }
 0x130   : > { %v3949_v9 = vcombine.low %v1805_v50, %v1808_v41  ;;  %v1459_v7 = vshrl.u32 %v3878_v47, 16  ;;  %v3959_v10 = vcombine.low %v1798_v48, %v1801_v52  ;;  %v3226_v12 = vpack.c.bf16 %v601_v56, %v601_v56 }
 0x131   : > { %2293 = vrot.lane.b32.xlu1 %v3914_v22, %s3439_s15  ;;  %2264 = vrot.lane.b32.xlu0 %v3853_v40, %s3432_s6  ;;  %v1021_v3 = vshrl.u32 %v3228_v55, 16  ;;  %v1024_v5 = vshll.u32 %v3228_v55, 16  ;;  %v3967_v13 = vcombine.low %v3961_v11, %v3963_v49  ;;  %v1477_v14 = vrot.slane %v1476_v53, 4 }
 0x132   : > { %v538_v16 = vadd.f32 %v3609_v39, %v537_v0  ;;  %v1491_v17 = vrot.slane %v1489_v62, 5  ;;  %v1004_v20 = vshrl.u32 %v3226_v12, 16  ;;  %v1007_v23 = vshll.u32 %v3226_v12, 16 }
 0x133   : > { %v1023_v15 = vrot.slane %v1021_v3, 7  ;;  %v1487_v51 = vrot.slane %v1486_v2, 4  ;;  %v1455_v28 = vshll.u32 %v3878_v47, 16  ;;  %v1448_v8 = vrot.slane %v1446_v58, 4  ;;  %v3310_v2 = vpop.f32.mrf.mxu0 }
 0x134   : > { %v602_v30 = vmax.f32 %v538_v16, 0.0  ;;  %v1006_v33 = vrot.slane %v1004_v20, 7  ;;  %v1482_v34 = vsel %vm3572_vm13, %v1477_v14, %v3936_v37  ;;  %v1461_v38 = vrot.slane %v1459_v7, 4 }
 0x135   : > { %2042 = vrot.lane.b32.xlu1 %v3914_v22, %s3434_s8  ;;  %2295 = vrot.lane.b32.xlu0 %v3867_v19, %s3439_s15  ;;  %v1449_v19 = vshll.u32 %v3876_v46, 16  ;;  %v604_v46 = vmax.f32 %v546_v57, 0.0  ;;  %v1026_v29 = vor.u32 %v1024_v5, %v1023_v15  ;;  %v1027_v50 = vrot.slane %v1023_v15, 4  ;;  %v550_v16 = vpop.f32.mrf.mxu0 }
 0x136   : > { %v3227_v44 = vpack.c.bf16 %v602_v30, %v602_v30  ;;  %v1009_v41 = vor.u32 %v1007_v23, %v1006_v33  ;;  %v3982_v43 = vrot.slane %v1455_v28, 5  ;;  %v1010_v55 = vrot.slane %v1006_v33, 4  ;;  %v4009_v23 = vld [vmem:[#allocation2 + $0x68] sm:$0x1] }
 0x137   : > { %v3229_v25 = vpack.c.bf16 %v604_v46, %v604_v46  ;;  %v1451_v35 = vrot.slane %v1449_v19, 5  ;;  %v1234_v47 = vsel %vm3625_vm14, %v1026_v29, %v1233_v42  ;;  %v1230_v19 = vld [vmem:[#allocation2 + $0x8c] sm:$0x1]  ;;  %v1465_v5 = vshll.u32 %v3912_v18, 16  ;;  %v667_v18 = vld [vmem:[#allocation2 + $0xa8] sm:$0x1] }
 0x138   : > { %1235 = vst [vmem:[#allocation2 + $0x90] sm:$0xf] %v1234_v47  ;;  %v1012_v60 = vshrl.u32 %v3227_v44, 16  ;;  %v1015_v48 = vshll.u32 %v3227_v44, 16  ;;  %v1227_v37 = vsel %vm3625_vm14, %v1009_v41, %v1226_v36  ;;  %v1462_v3 = vor.u32 %v1461_v38, %v3982_v43  ;;  %v4027_v29 = vld [vmem:[%s4877_s2] ss:$0 sm:$0xff] }
 0x139   : > { %2231 = vrot.lane.b32.xlu1 %v3949_v9, %s3436_s12  ;;  %2159 = vrot.lane.b32.xlu0 %v3888_v59, %s3435_s11  ;;  %v1029_v1 = vshrl.u32 %v3229_v25, 16  ;;  %v1032_v39 = vshll.u32 %v3229_v25, 16  ;;  %1228 = vst [vmem:[#allocation2 + $0x84] sm:$0xf] %v1227_v37  ;;  %v1452_v58 = vor.u32 %v1451_v35, %v1448_v8  ;;  %v1818_v15 = vrot.slane %v3963_v49, 5  ;;  %v3311_v35 = vpop.f32.mrf.mxu0 }
 0x13a   : > { %v1014_v56 = vrot.slane %v1012_v60, 7  ;;  %v1463_v42 = vrot.slane %v1462_v3, 4  ;;  %v1467_v20 = vrot.slane %v1465_v5, 5  ;;  %v4017_v25 = vld [vmem:[#allocation2 + $0x58] sm:$0xf]  ;;  %v559_v30 = vadd.f32 %v4027_v29, %v3310_v2 }
 0x13b   : > { %v1031_v31 = vrot.slane %v1029_v1, 7  ;;  %v664_v8 = vld [vmem:[#allocation2 + $0x9c] sm:$0x1]  ;;  %v3117_v33 = vrot.slane %v3961_v11, 9  ;;  %v1820_v1 = vrot.slane %v1818_v15, 4  ;;  %v551_v38 = vadd.f32 %v4027_v29, %v550_v16 }
 0x13c   : > { %v1017_v7 = vor.u32 %v1015_v48, %v1014_v56  ;;  %v1019_v12 = vrot.slane %v1014_v56, 4  ;;  %v1468_v36 = vsel %vm3572_vm13, %v1463_v42, %v1467_v20  ;;  %v607_v44 = vmax.f32 %v559_v30, 0.0  ;;  %v4050_v60 = vld [vmem:[#allocation2 + $0x5c] sm:$0x1]  ;;  %v553_v56 = vpop.f32.mrf.mxu0  ;;  %v720_v2 = vld [vmem:[#allocation2 + $0xa4] sm:$0x1] }
 0x13d   : > { %2126 = vrot.lane.b32.xlu1 %v3959_v10, %s3433_s7  ;;  %2190 = vrot.lane.b32.xlu0 %v3914_v22, %s3438_s14  ;;  %v1492_v22 = vsel %vm3572_vm13, %v1487_v51, %v1491_v17  ;;  %v1034_v52 = vor.u32 %v1032_v39, %v1031_v31  ;;  %v1036_v53 = vrot.slane %v1031_v31, 4  ;;  %v1453_v17 = vrot.slane %v1452_v58, 4 }
 0x13e   : > { %v3990_v57 = vcombine.low %v1482_v34, %v1492_v22  ;;  %v1018_v46 = vsel %vm3635_vm0, %v1010_v55, %v1017_v7  ;;  %v1231_v14 = vsel %vm3532_vm5, %v1019_v12, %v1230_v19  ;;  %v1518_v51 = vshrl.u32 %v3961_v11, 16 }
 0x13f   : > { %v1035_v62 = vsel %vm3635_vm0, %v1027_v50, %v1034_v52  ;;  %v1238_v0 = vsel %vm3532_vm5, %v1036_v53, %v1237_v45  ;;  %1229 = vst.msk [vmem:[#allocation2 + $0x88] sm:$0xf] %vm613_vm2, %v1018_v46  ;;  %1232 = vst [vmem:[#allocation2 + $0x8c] sm:$0x1] %v1231_v14  ;;  %v1821_v39 = vrot.slane %v4009_v23, 5  ;;  %v668_v34 = vsel %vm3532_vm5, 0, %v667_v18 }
 0x140   : > { %1236 = vst.msk [vmem:[#allocation2 + $0x94] sm:$0xf] %vm613_vm2, %v1035_v62  ;;  %1239 = vst [vmem:[#allocation2 + $0x98] sm:$0x1] %v1238_v0  ;;  %v1458_v47 = vsel %vm3572_vm13, %v1453_v17, %v3982_v43  ;;  %v723_v50 = vld [vmem:[#allocation2 + $0xb0] sm:$0x1]  ;;  %v3232_v48 = vpack.c.bf16 %v607_v44, %v607_v44  ;;  %v1819_v53 = vsel %vm3564_vm10, %v3117_v33, %v1818_v15 }
 0x141   : > { %2165 = vrot.lane.b32.xlu1 %v3967_v13, %s3435_s11  ;;  %2334 = vrot.lane.b32.xlu0 %v3949_v9, %s3437_s13  ;;  %669 = vst [vmem:[#allocation2 + $0xa8] sm:$0x1] %v668_v34  ;;  %v1521_v41 = vshll.u32 %v3961_v11, 16  ;;  %v1531_v31 = vshrl.u32 %v3963_v49, 16  ;;  %v1811_v22 = vrot.slane %v4017_v25, 5  ;;  %v665_v43 = vsel %vm3532_vm5, 0, %v664_v8 }
 0x142   : > { %v605_v37 = vmax.f32 %v551_v38, 0.0  ;;  %666 = vst [vmem:[#allocation2 + $0x9c] sm:$0x1] %v665_v43  ;;  %v562_v11 = vadd.f32 %v4027_v29, %v3311_v35  ;;  %v4053_v52 = vcombine.low %v1458_v47, %v1468_v36  ;;  %v724_v55 = vsel %vm3539_vm7, 0, %v723_v50 }
 0x143   : > { %v1527_v62 = vshll.u32 %v3963_v49, 16  ;;  %v1055_v0 = vshrl.u32 %v3232_v48, 16  ;;  %v1058_v19 = vshll.u32 %v3232_v48, 16  ;;  %725 = vst [vmem:[#allocation2 + $0xb0] sm:$0x1] %v724_v55  ;;  %v1813_v3 = vrot.slane %v1811_v22, 4 }
 0x144   : > { %v1814_v5 = vrot.slane %v4050_v60, 5  ;;  %v3230_v7 = vpack.c.bf16 %v605_v37, %v605_v37  ;;  %v608_v12 = vmax.f32 %v562_v11, 0.0  ;;  %v1520_v46 = vrot.slane %v1518_v51, 4 }
 0x145   : > { %2196 = vrot.lane.b32.xlu1 %v3990_v57, %s3438_s14  ;;  %2128 = vrot.lane.b32.xlu0 %v3949_v9, %s3433_s7  ;;  %v4015_v9 = vld [vmem:[#allocation2 + $0x54] sm:$0xf]  ;;  %v1523_v14 = vrot.slane %v1521_v41, 5  ;;  %v1057_v15 = vrot.slane %v1055_v0, 7  ;;  %v554_v49 = vadd.f32 %v4027_v29, %v553_v56  ;;  %v721_v20 = vsel %vm3539_vm7, 0, %v720_v2 }
 0x146   : > { %v4022_v28 = vcombine.low %v4015_v9, %v4017_v25  ;;  %v1494_v45 = vshrl.u32 %v4015_v9, 16  ;;  %v3116_v58 = vrot.slane %v4015_v9, 9  ;;  %v1038_v16 = vshrl.u32 %v3230_v7, 16  ;;  %722 = vst [vmem:[#allocation2 + $0xa4] sm:$0x1] %v721_v20 }
 0x147   : > { %v1041_v17 = vshll.u32 %v3230_v7, 16  ;;  %v3233_v42 = vpack.c.bf16 %v608_v12, %v608_v12  ;;  %v4071_v30 = vrot.slane %v1527_v62, 5  ;;  %v1533_v8 = vrot.slane %v1531_v31, 4 }
 0x148   : > { %v1247_v18 = vld [vmem:[#allocation2 + $0xa8] sm:$0xf]  ;;  %v1060_v33 = vor.u32 %v1058_v19, %v1057_v15  ;;  %v1812_v47 = vsel %vm3564_vm10, %v3116_v58, %v1811_v22  ;;  %v1815_v36 = vsel %vm3564_vm10, %v1813_v3, %v1814_v5  ;;  %v1524_v41 = vor.u32 %v1523_v14, %v1520_v46 }
 0x149   : > { %2048 = vrot.lane.b32.xlu1 %v3990_v57, %s3434_s8  ;;  %2332 = vrot.lane.b32.xlu0 %v3959_v10, %s3437_s13  ;;  %v1063_v34 = vshrl.u32 %v3233_v42, 16  ;;  %v1066_v35 = vshll.u32 %v3233_v42, 16  ;;  %v1240_v38 = vld [vmem:[#allocation2 + $0x9c] sm:$0xf]  ;;  %v1061_v31 = vrot.slane %v1057_v15, 4  ;;  %v1534_v48 = vor.u32 %v1533_v8, %v4071_v30 }
 0x14a   : > { %v1248_v44 = vsel %vm3625_vm14, %v1060_v33, %v1247_v18  ;;  %v1537_v37 = vshll.u32 %v4009_v23, 16  ;;  %v1251_v11 = vld [vmem:[#allocation2 + $0xb0] sm:$0x1]  ;;  %v1507_v62 = vshrl.u32 %v4017_v25, 16  ;;  %v4095_v0 = vcombine.low %v1812_v47, %v1815_v36  ;;  %v4109_v18 = vld [vmem:[#allocation2 + $0x7c] sm:$0xf]  ;;  %v4132_v47 = vpop.permute.xlu1 %2286 }
 0x14b   : > { %1249 = vst [vmem:[#allocation2 + $0xa8] sm:$0xf] %v1248_v44  ;;  %v1065_v43 = vrot.slane %v1063_v34, 7  ;;  %v1525_v2 = vrot.slane %v1524_v41, 4  ;;  %v1503_v3 = vshll.u32 %v4017_v25, 16  ;;  %v1535_v46 = vrot.slane %v1534_v48, 4 }
 0x14c   : > { %v1539_v14 = vrot.slane %v1537_v37, 5  ;;  %v4107_v25 = vld [vmem:[#allocation2 + $0x78] sm:$0xf]  ;;  %4895 = vst [vmem:[#allocation3_spill] sm:$0xff] %v4132_v47  ;;  %v3411_v37 = vld [vmem:[%s4878_s3 + $0x10] sm:$0xff]  }
 0x14d   : > { %2266 = vrot.lane.b32.xlu1 %v4022_v28, %s3432_s6  ;;  %2229 = vrot.lane.b32.xlu0 %v3959_v10, %s3436_s12  ;;  %v1822_v10 = vsel %vm3564_vm10, %v1820_v1, %v1821_v39  ;;  %v606_v1 = vmax.f32 %v554_v49, 0.0  ;;  %v1040_v39 = vrot.slane %v1038_v16, 7  ;;  %v1068_v56 = vor.u32 %v1066_v35, %v1065_v43  ;;  %v1244_v12 = vld [vmem:[#allocation2 + $0xa4] sm:$0x1]  ;;  %v3409_v16 = vld [vmem:[%s4878_s3 + $0x20] ss:$0 sps:$4 sm:$0xff]  }
 0x14e   : > { %v4077_v51 = vcombine.low %v1819_v53, %v1822_v10  ;;  %v1497_v10 = vshll.u32 %v4015_v9, 16  ;;  %v1070_v58 = vrot.slane %v1065_v43, 4  ;;  %v4116_v42 = vcombine.low %v4107_v25, %v4109_v18  ;;  %v3410_v9 = vld [vmem:[%s4878_s3 + $0x18] sm:$0xff]   ;;  %3359 = vmatprep.subr.msk.bf16.mxu1 %vm2714_vm1, %v3409_v16 }
 0x14f   : > { %v3231_v50 = vpack.c.bf16 %v606_v1, %v606_v1  ;;  %v1044_v23 = vrot.slane %v1040_v39, 4  ;;  %v1069_v5 = vsel %vm3635_vm0, %v1061_v31, %v1068_v56  ;;  %v4124_v1 = vrot.slane %v1503_v3, 5  ;;  %v3412_v56 = vld [vmem:[%s4878_s3 + $0x8] sm:$0xff]  }
 0x150   : > { %v1252_v7 = vsel %vm3532_vm5, %v1070_v58, %v1251_v11  ;;  %1250 = vst.msk [vmem:[#allocation2 + $0xac] sm:$0xf] %vm613_vm2, %v1069_v5  ;;  %v1499_v33 = vrot.slane %v1497_v10, 5  ;;  %v1530_v34 = vsel %vm3572_vm13, %v1525_v2, %v4071_v30  ;;  %v1540_v35 = vsel %vm3572_vm13, %v1535_v46, %v1539_v14  ;;  %v673_v30 = vld [vmem:[#allocation2 + $0xc0] sm:$0x1]  ;;  %v4164_v58 = vpop.permute.xlu1 %2116 }
 0x151   : > { %2297 = vrot.lane.b32.xlu1 %v4053_v52, %s3439_s15  ;;  %2268 = vrot.lane.b32.xlu0 %v3967_v13, %s3432_s6  ;;  %v1046_v53 = vshrl.u32 %v3231_v50, 16  ;;  %v1049_v22 = vshll.u32 %v3231_v50, 16  ;;  %1253 = vst [vmem:[#allocation2 + $0xb0] sm:$0x1] %v1252_v7  ;;  %v2716_v36 = vsel %vm2714_vm1, %v3409_v16, 0  ;;  %v1513_v31 = vshll.u32 %v4050_v60, 16 }
 0x152   : > { %3317 = vmatpush3.bf16.msra.mxu1 %v2716_v36  ;;  %v674_v48 = vsel %vm3532_vm5, 0, %v673_v30  ;;  %v729_v11 = vld [vmem:[#allocation2 + $0xc8] sm:$0x1]  ;;  %v4172_v5 = vld [vmem:[#allocation2 + $0x70] sm:$0xf] }
 0x153   : > { %v1048_v19 = vrot.slane %v1046_v53, 7  ;;  %3318 = vmatprep.subr.bf16.mxu1 %v3410_v9  ;;  %675 = vst [vmem:[#allocation2 + $0xc0] sm:$0x1] %v674_v48  ;;  %v1515_v2 = vrot.slane %v1513_v31, 5  ;;  %v730_v3 = vsel %vm3539_vm7, 0, %v729_v11  ;;  %v3414_v31 = vld [vmem:[%s4878_s3] sm:$0xff]  }
 0x154   : > { %v4174_v7 = vld [vmem:[#allocation2 + $0x80] sm:$0x1]  ;;  %731 = vst [vmem:[#allocation2 + $0xc8] sm:$0x1] %v730_v3  ;;  %v1825_v3 = vrot.slane %v4172_v5, 5  ;;  %v1555_v27 = vshrl.u32 %v4172_v5, 16 }
 0x155   : > { %2046 = vrot.lane.b32.xlu1 %v4053_v52, %s3434_s8  ;;  %2299 = vrot.lane.b32.xlu0 %v3990_v57, %s3439_s15  ;;  %v1043_v57 = vor.u32 %v1041_v17, %v1040_v39  ;;  %v1051_v15 = vor.u32 %v1049_v22, %v1048_v19  ;;  %v1053_v49 = vrot.slane %v1048_v19, 4  ;;  %v3314_v17 = vpop.f32.mrf.mxu0  ;;  %v1509_v39 = vrot.slane %v1507_v62, 4  ;;  %v4166_v62 = vld [vmem:[#allocation2 + $0x6c] sm:$0xf] }
 0x156   : > { %v575_v43 = vadd.f32 %v4027_v29, %v3314_v17  ;;  %3319 = vmatpush3.bf16.msra.mxu1 %v3410_v9  ;;  %v4184_v16 = vcombine.low %v4166_v62, %v4172_v5  ;;  %v1832_v17 = vrot.slane %v4109_v18, 5  ;;  %v1835_v36 = vrot.slane %v4174_v7, 5 }
 0x157   : > { %v1241_v55 = vsel %vm3625_vm14, %v1043_v57, %v1240_v38  ;;  %v1052_v20 = vsel %vm3635_vm0, %v1044_v23, %v1051_v15  ;;  %v1245_v8 = vsel %vm3532_vm5, %v1053_v49, %v1244_v12  ;;  %v566_v44 = vpop.f32.mrf.mxu0  ;;  %v4143_v38 = vcombine.low %v1530_v34, %v1540_v35  ;;  %v670_v57 = vld [vmem:[#allocation2 + $0xb4] sm:$0x1]  ;;  %3320 = vmatprep.subr.bf16.mxu1 %v3411_v37  ;;  %v726_v34 = vld [vmem:[#allocation2 + $0xbc] sm:$0x1] }
 0x158   : > { %1242 = vst [vmem:[#allocation2 + $0x9c] sm:$0xf] %v1241_v55  ;;  %1243 = vst.msk [vmem:[#allocation2 + $0xa0] sm:$0xf] %vm613_vm2, %v1052_v20  ;;  %v1510_v41 = vor.u32 %v1509_v39, %v4124_v1  ;;  %v611_v53 = vmax.f32 %v575_v43, 0.0  ;;  %v567_v22 = vadd.f32 %v4027_v29, %v566_v44  ;;  %v671_v10 = vsel %vm3532_vm5, 0, %v670_v57 }
 0x159   : > { %2235 = vrot.lane.b32.xlu1 %v4077_v51, %s3436_s12  ;;  %2163 = vrot.lane.b32.xlu0 %v4022_v28, %s3435_s11  ;;  %1246 = vst [vmem:[#allocation2 + $0xa4] sm:$0x1] %v1245_v8  ;;  %v3315_v60 = vpop.f32.mrf.mxu0  ;;  %672 = vst [vmem:[#allocation2 + $0xb4] sm:$0x1] %v671_v10  ;;  %v1566_v15 = vshrl.u32 %v4107_v25, 16  ;;  %v1569_v49 = vshll.u32 %v4107_v25, 16 }
 0x15a   : > { %v578_v55 = vadd.f32 %v4027_v29, %v3315_v60  ;;  %v1511_v19 = vrot.slane %v1510_v41, 4  ;;  %v3236_v12 = vpack.c.bf16 %v611_v53, %v611_v53  ;;  %v609_v46 = vmax.f32 %v567_v22, 0.0  ;;  %3321 = vmatpush3.bf16.msra.mxu1 %v3411_v37  ;;  %v1261_v48 = vld [vmem:[#allocation2 + $0xc0] sm:$0xf] }
 0x15b   : > { %v569_v20 = vpop.f32.mrf.mxu0  ;;  %v3119_v8 = vrot.slane %v4107_v25, 9  ;;  %3322 = vmatprep.subr.bf16.mxu1 %v3412_v56  ;;  %v1834_v43 = vrot.slane %v1832_v17, 4  ;;  %v1579_v60 = vshrl.u32 %v4109_v18, 16  ;;  %v1551_v21 = vshll.u32 %v4172_v5, 16 }
 0x15c   : > { %v612_v14 = vmax.f32 %v578_v55, 0.0  ;;  %v3234_v39 = vpack.c.bf16 %v609_v46, %v609_v46  ;;  %v1516_v9 = vsel %vm3572_vm13, %v1511_v19, %v1515_v2  ;;  %v570_v25 = vadd.f32 %v4027_v29, %v569_v20  ;;  %v1265_v20 = vld [vmem:[#allocation2 + $0xc8] sm:$0x1] }
 0x15d   : > { %2130 = vrot.lane.b32.xlu1 %v4095_v0, %s3433_s7  ;;  %2194 = vrot.lane.b32.xlu0 %v4053_v52, %s3438_s14  ;;  %v1496_v52 = vrot.slane %v1494_v45, 4  ;;  %v4141_v45 = vpop.permute.xlu0 %2036  ;;  %v727_v29 = vsel %vm3539_vm7, 0, %v726_v34  ;;  %v1833_v53 = vsel %vm3564_vm10, %v3119_v8, %v1832_v17  ;;  %v1836_v17 = vsel %vm3564_vm10, %v1834_v43, %v1835_v36 }
 0x15e   : > { %v3237_v30 = vpack.c.bf16 %v612_v14, %v612_v14  ;;  %v1075_v41 = vshll.u32 %v3234_v39, 16  ;;  %728 = vst [vmem:[#allocation2 + $0xbc] sm:$0x1] %v727_v29  ;;  %v610_v2 = vmax.f32 %v570_v25, 0.0  ;;  %3323 = vmatpush3.bf16.msra.mxu1 %v3412_v56  ;;  %v4223_v56 = vld [vmem:[#allocation2 + $0x74] sm:$0x1] }
 0x15f   : > { %v1500_v50 = vor.u32 %v1499_v33, %v1496_v52  ;;  %v1089_v52 = vshrl.u32 %v3236_v12, 16  ;;  %v1092_v33 = vshll.u32 %v3236_v12, 16  ;;  %v1575_v12 = vshll.u32 %v4109_v18, 16  ;;  %3324 = vmatprep.subr.bf16.mxu1 %v3414_v31 }
 0x160   : > { %v1097_v37 = vshrl.u32 %v3237_v30, 16  ;;  %v1100_v11 = vshll.u32 %v3237_v30, 16  ;;  %v1571_v34 = vrot.slane %v1569_v49, 5  ;;  %v1827_v25 = vrot.slane %v1825_v3, 4 }
 0x161   : > { %2169 = vrot.lane.b32.xlu1 %v4116_v42, %s3435_s11  ;;  %2338 = vrot.lane.b32.xlu0 %v4077_v51, %s3437_s13  ;;  %v1091_v44 = vrot.slane %v1089_v52, 7  ;;  %v3235_v52 = vpack.c.bf16 %v610_v2, %v610_v2  ;;  %v1577_v49 = vrot.slane %v1575_v12, 5  ;;  %v1581_v4 = vrot.slane %v1579_v60, 4 }
 0x162   : > { %v1099_v19 = vrot.slane %v1097_v37, 7  ;;  %3325 = vmatpush3.bf16.msra.mxu1 %v3414_v31  ;;  %v3169_v31 = vcombine.low %v1833_v53, %v1836_v17  ;;  %v1545_v12 = vshll.u32 %v4166_v62, 16 }
 0x163   : > { %v1094_v22 = vor.u32 %v1092_v33, %v1091_v44  ;;  %v3118_v33 = vrot.slane %v4166_v62, 9  ;;  %v1582_v2 = vor.u32 %v1581_v4, %v1577_v49 }
 0x164   : > { %v1102_v8 = vor.u32 %v1100_v11, %v1099_v19  ;;  %v1104_v18 = vrot.slane %v1099_v19, 4 }
 0x165   : > { %2200 = vrot.lane.b32.xlu1 %v4143_v38, %s3438_s14  ;;  %2132 = vrot.lane.b32.xlu0 %v4077_v51, %s3433_s7  ;;  %v1501_v51 = vrot.slane %v1500_v50, 4  ;;  %v1072_v50 = vshrl.u32 %v3234_v39, 16  ;;  %v1262_v46 = vsel %vm3625_vm14, %v1094_v22, %v1261_v48  ;;  %v1568_v39 = vrot.slane %v1566_v15, 4  ;;  %v1258_v37 = vld [vmem:[#allocation2 + $0xbc] sm:$0x1] }
 0x166   : > { %v4168_v23 = vpop.permute.xlu0 %2256  ;;  %1263 = vst [vmem:[#allocation2 + $0xc0] sm:$0xf] %v1262_v46  ;;  %v1828_v15 = vrot.slane %v4223_v56, 5  ;;  %v1583_v17 = vrot.slane %v1582_v2, 4  ;;  %v4306_v2 = vld [vmem:[#allocation2 + $0xd0] sm:$0xf] }
 0x167   : > { %v1506_v35 = vsel %vm3572_vm13, %v1501_v51, %v4124_v1  ;;  %v4200_v1 = vpop.permute.xlu1 %2153  ;;  %v1074_v10 = vrot.slane %v1072_v50, 7  ;;  %v1254_v51 = vld [vmem:[#allocation2 + $0xb4] sm:$0xf]  ;;  %v1080_v50 = vshrl.u32 %v3235_v52, 16  ;;  %v1572_v22 = vor.u32 %v1571_v34, %v1568_v39 }
 0x168   : > { %v4211_v55 = vcombine.low %v1506_v35, %v1516_v9  ;;  %v1829_v19 = vsel %vm3564_vm10, %v1827_v25, %v1828_v15  ;;  %v1557_v25 = vrot.slane %v1555_v27, 4 }
 0x169   : > { %2052 = vrot.lane.b32.xlu1 %v4143_v38, %s3434_s8  ;;  %2336 = vrot.lane.b32.xlu0 %v4095_v0, %s3437_s13  ;;  %v1077_v14 = vor.u32 %v1075_v41, %v1074_v10  ;;  %v1083_v41 = vshll.u32 %v3235_v52, 16  ;;  %v1078_v43 = vrot.slane %v1074_v10, 4  ;;  %v1082_v48 = vrot.slane %v1080_v50, 7  ;;  %v4276_v52 = vld [vmem:[#allocation2 + $0x90] sm:$0xf] }
 0x16a   : > { %v4204_v57 = vpop.permute.xlu0 %2151  ;;  %v1547_v50 = vrot.slane %v1545_v12, 5 }
 0x16b   : > { %v1255_v35 = vsel %vm3625_vm14, %v1077_v14, %v1254_v51  ;;  %v1087_v60 = vrot.slane %v1082_v48, 4  ;;  %v1826_v51 = vsel %vm3564_vm10, %v3118_v33, %v1825_v3  ;;  %v1542_v3 = vshrl.u32 %v4166_v62, 16  ;;  %v4273_v62 = vld [vmem:[#allocation2 + $0xcc] sm:$0xf]  ;;  %v4278_v33 = vld [vmem:[#allocation2 + $0x94] sm:$0xf] }
 0x16c   : > { %1256 = vst [vmem:[#allocation2 + $0xb4] sm:$0xf] %v1255_v35  ;;  %v1910_v39 = vshll.u32 %v4273_v62, 16  ;;  %v4285_v5 = vcombine.low %v4276_v52, %v4278_v33 }
 0x16d   : > { %2270 = vrot.lane.b32.xlu1 %v4184_v16, %s3432_s6  ;;  %2233 = vrot.lane.b32.xlu0 %v4095_v0, %s3436_s12  ;;  %v1095_v0 = vrot.slane %v1091_v44, 4  ;;  %v1266_v44 = vsel %vm3532_vm5, %v1104_v18, %v1265_v20  ;;  %v1259_v10 = vsel %vm3532_vm5, %v1087_v60, %v1258_v37  ;;  %v1573_v20 = vrot.slane %v1572_v22, 4  ;;  %v3420_v60 = vld [vmem:[#allocation2] sm:$0xf] }
 0x16e   : > { %1267 = vst [vmem:[#allocation2 + $0xc8] sm:$0x1] %v1266_v44  ;;  %1260 = vst [vmem:[#allocation2 + $0xbc] sm:$0x1] %v1259_v10  ;;  %v1907_v18 = vshrl.u32 %v4273_v62, 16  ;;  %v1912_v4 = vrot.slane %v1910_v39, 5 }
 0x16f   : > { %v1103_v36 = vsel %vm3635_vm0, %v1095_v0, %v1102_v8  ;;  %v1085_v0 = vor.u32 %v1083_v41, %v1082_v48  ;;  %4896 = vst [vmem:[#allocation4_spill] sm:$0xff] %v4285_v5  ;;  %v1553_v41 = vrot.slane %v1551_v21, 5  ;;  %v1846_v21 = vrot.slane %v4278_v33, 5  ;;  %v4325_v39 = vld [vmem:[#allocation2 + $0x88] sm:$0xf] }
 0x170   : > { %1264 = vst.msk [vmem:[#allocation2 + $0xc4] sm:$0xf] %vm613_vm2, %v1103_v36  ;;  %v1544_v36 = vrot.slane %v1542_v3, 4  ;;  %v1909_v15 = vrot.slane %v1907_v18, 4  ;;  %v4323_v18 = vld [vmem:[#allocation2 + $0x84] sm:$0xf] }
 0x171   : > { %2301 = vrot.lane.b32.xlu1 %v4211_v55, %s3439_s15  ;;  %2272 = vrot.lane.b32.xlu0 %v4116_v42, %s3432_s6  ;;  %v1086_v53 = vsel %vm3635_vm0, %v1078_v43, %v1085_v0  ;;  %v1558_v22 = vor.u32 %v1557_v25, %v1553_v41  ;;  %v1561_v0 = vshll.u32 %v4223_v56, 16  ;;  %v4339_v25 = vcombine.low %v4323_v18, %v4325_v39 }
 0x172   : > { %1257 = vst.msk [vmem:[#allocation2 + $0xb8] sm:$0xf] %vm613_vm2, %v1086_v53  ;;  %vm2358_vm2 = vcmask 64512   ;;  %v1920_v53 = vshrl.u32 %v4306_v2, 16  ;;  %v1913_v10 = vor.u32 %v1912_v4, %v1909_v15  ;;  %vm2473_vm5 = vcmask 261120  }
 0x173   : > { %v4228_v9 = vpop.permute.xlu1 %2223  ;;  %v4230_v30 = vpop.permute.xlu0 %2326  ;;  %v1559_v27 = vrot.slane %v1558_v22, 4 }
 0x175   : > { %2050 = vrot.lane.b32.xlu1 %v4211_v55, %s3434_s8  ;;  %2303 = vrot.lane.b32.xlu0 %v4143_v38, %s3439_s15  ;;  %v1585_v38 = vshll.u32 %v4174_v7, 16  ;;  %v4263_v7 = vcombine.low %v1826_v51, %v1829_v19  ;;  %v3421_v51 = vld [vmem:[#allocation2 + $0x4] sm:$0xf] }
 0x176   : > { %v3127_v19 = vcombine.low %v3420_v60, %v3421_v51  ;;  %v1848_v60 = vrot.slane %v1846_v21, 4 }
 0x177   : > { %v4242_v11 = vpop.permute.xlu1 %2118  ;;  %v4244_v29 = vpop.permute.xlu0 %2120  ;;  %v1587_v8 = vrot.slane %v1585_v38, 5  ;;  %v1916_v38 = vshll.u32 %v4306_v2, 16 }
 0x179   : > { %2239 = vrot.lane.b32.xlu1 %v3169_v31, %s3436_s12  ;;  %2167 = vrot.lane.b32.xlu0 %v4184_v16, %s3435_s11  ;;  %v1588_v44 = vsel %vm3572_vm13, %v1583_v17, %v1587_v8  ;;  %v1563_v17 = vrot.slane %v1561_v0, 5  ;;  %v3121_v0 = vrot.slane %v4276_v52, 9 }
 0x17b   : > { %v4261_v46 = vpop.permute.xlu1 %2157  ;;  %v4265_v14 = vpop.permute.xlu0 %2221  ;;  %v1564_v22 = vsel %vm3572_vm13, %v1559_v27, %v1563_v17  ;;  %v4362_v17 = vld [vmem:[#allocation2 + $0x8c] sm:$0x1] }
 0x17d   : > { %2134 = vrot.lane.b32.xlu1 %v4263_v7, %s3433_s7  ;;  %2198 = vrot.lane.b32.xlu0 %v4211_v55, %s3438_s14  ;;  %v1578_v55 = vsel %vm3572_vm13, %v1573_v20, %v1577_v49  ;;  %v1548_v49 = vor.u32 %v1547_v50, %v1544_v36  ;;  %v4329_v36 = vrot.slane %v1916_v38, 5 }
 0x17e   : > { %v4298_v48 = vcombine.low %v1578_v55, %v1588_v44  ;;  %v4327_v55 = vld [vmem:[#allocation2 + $0x98] sm:$0x1]  ;;  %v4331_v44 = vrot.slane %v1920_v53, 4 }
 0x17f   : > { %v4281_v34 = vpop.permute.xlu1 %2188  ;;  %v4287_v35 = vpop.permute.xlu0 %2260  ;;  %v1549_v20 = vrot.slane %v1548_v49, 4  ;;  %v1849_v51 = vrot.slane %v4327_v55, 5 }
 0x181   : > { %2173 = vrot.lane.b32.xlu1 %v4285_v5, %s3435_s11  ;;  %2342 = vrot.lane.b32.xlu0 %v3169_v31, %s3437_s13  ;;  %v1554_v49 = vsel %vm3572_vm13, %v1549_v20, %v1553_v41  ;;  %v1627_v41 = vshrl.u32 %v4278_v33, 16  ;;  %v1839_v20 = vrot.slane %v4325_v39, 5 }
 0x183   : > { %v4296_v43 = vpop.permute.xlu1 %2040  ;;  %v4300_v37 = vpop.permute.xlu0 %2291  ;;  %v1841_v56 = vrot.slane %v1839_v20, 4 }
 0x185   : > { %2204 = vrot.lane.b32.xlu1 %v4298_v48, %s3438_s14  ;;  %2136 = vrot.lane.b32.xlu0 %v3169_v31, %s3433_s7  ;;  %v2361_v31 = vsel %vm2358_vm2, %v3127_v19, %v4141_v45  ;;  %v4333_v45 = vrot.slane %v1913_v10, 4  ;;  %v1617_v19 = vshll.u32 %v4276_v52, 16  ;;  %v3152_v10 = vcombine.low %v1554_v49, %v1564_v22  ;;  %v732_v49 = vld [vmem:[#allocation2 + $0xd4] sm:$0x1] }
 0x186   : > { %v2409_v4 = vsel %vm2407_vm3, %v2361_v31, %v4164_v58  ;;  %v1614_v58 = vshrl.u32 %v4276_v52, 16  ;;  %v1623_v52 = vshll.u32 %v4278_v33, 16  ;;  %v1847_v31 = vsel %vm3564_vm10, %v3121_v0, %v1846_v21 }
 0x187   : > { %v4310_v3 = vpop.permute.xlu1 %2258  ;;  %v4312_v12 = vpop.permute.xlu0 %2155  ;;  %v2442_v38 = vsel %vm2440_vm4, %v2409_v4, %v4204_v57  ;;  %v1850_v4 = vsel %vm3564_vm10, %v1848_v60, %v1849_v51  ;;  %v3120_v33 = vrot.slane %v4323_v18, 9  ;;  %v1842_v21 = vrot.slane %v4362_v17, 5 }
 0x188   : > { %v1629_v0 = vrot.slane %v1627_v41, 4  ;;  %v1625_v51 = vrot.slane %v1623_v52, 5 }
 0x189   : > { %2056 = vrot.lane.b32.xlu1 %v4298_v48, %s3434_s8  ;;  %2340 = vrot.lane.b32.xlu0 %v4263_v7, %s3437_s13 }
 0x18b   : > { %v4335_v50 = vpop.permute.xlu1 %2227  ;;  %v2039_v15 = vpop.permute.xlu0 %2038 }
 0x18c   : > { %v2364_v60 = vsel %vm2358_vm2, %v3692_v54, %v2039_v15  ;;  %v4897_v54 = vrot.slane %v4306_v2, 5  ;;  %v4898_v15 = vrot.slane %v4273_v62, 9  ;;  %v1840_v62 = vsel %vm3564_vm10, %v3120_v33, %v1839_v20  ;;  %v4436_v2 = vld [vmem:[#allocation2 + $0xac] sm:$0xf] }
 0x18d   : > { %2274 = vrot.lane.b32.xlu1 %v4339_v25, %s3432_s6  ;;  %2237 = vrot.lane.b32.xlu0 %v4263_v7, %s3436_s12 }
 0x18f   : > { %v4358_v53 = vpop.permute.xlu1 %2122  ;;  %v2187_v7 = vpop.permute.xlu0 %2186 }
 0x190   : > { %v2475_v27 = vsel %vm2473_vm5, %v2442_v38, %v2187_v7  ;;  %v1616_v38 = vrot.slane %v1614_v58, 4  ;;  %v1619_v7 = vrot.slane %v1617_v19, 5  ;;  %v733_v58 = vsel %vm3539_vm7, 0, %v732_v49 }
 0x191   : > { %2305 = vrot.lane.b32.xlu1 %v3152_v10, %s3439_s15  ;;  %v2508_v57 = vsel %vm2506_vm6, %v2475_v27, %v4265_v14  ;;  %2276 = vrot.lane.b32.xlu0 %v4285_v5, %s3432_s6  ;;  %734 = vst [vmem:[#allocation2 + $0xd4] sm:$0x1] %v733_v58  ;;  %v2411_v19 = vsel %vm2407_vm3, %v2364_v60, %v4242_v11  ;;  %v1590_v11 = vshrl.u32 %v4323_v18, 16 }
 0x192   : > { %v2541_v22 = vsel %vm2539_vm8, %v2508_v57, %v4168_v23  ;;  %v1620_v24 = vor.u32 %v1619_v7, %v1616_v38  ;;  %v1843_v57 = vsel %vm3564_vm10, %v1841_v56, %v1842_v21  ;;  %v1630_v49 = vor.u32 %v1629_v0, %v1625_v51 }
 0x193   : > { %v4377_v8 = vpop.permute.xlu1 %2161  ;;  %v4379_v14 = vpop.permute.xlu0 %2330  ;;  %v2574_v27 = vsel %vm2572_vm9, %v2541_v22, %v4300_v37  ;;  %v1919_v37 = vsel %vm3572_vm13, %v4333_v45, %v4329_v36  ;;  %v3171_v45 = vcombine.low %v1847_v31, %v1850_v4  ;;  %v1633_v22 = vshll.u32 %v4327_v55, 16 }
 0x194   : > { %v2607_v23 = vsel %vm2605_vm11, %v2574_v27, %v4230_v30  ;;  %v4403_v30 = vsel %vm3564_vm10, %v4898_v15, %v4897_v54  ;;  %v4899_v31 = vmov %v4897_v54  ;;  %v1593_v4 = vshll.u32 %v4323_v18, 16 }
 0x195   : > { %2054 = vrot.lane.b32.xlu1 %v3152_v10, %s3434_s8  ;;  %2307 = vrot.lane.b32.xlu0 %v4298_v48, %s3439_s15  ;;  %v1923_v48 = vor.u32 %v4331_v44, %v4329_v36  ;;  %v2444_v36 = vsel %vm2440_vm4, %v2411_v19, %v4200_v1  ;;  %v1621_v44 = vrot.slane %v1620_v24, 4  ;;  %v1937_v20 = vrot.slane %v4899_v31, 4  ;;  %v4434_v1 = vld [vmem:[#allocation2 + $0xa8] sm:$0xf] }
 0x196   : > { %3326 = vmatprep.mubr.msk.bf16.mxu1 %vm2681_vm12, %v2607_v23  ;;  %v1603_v56 = vshrl.u32 %v4325_v39, 16  ;;  %v3170_v55 = vcombine.low %v1840_v62, %v1843_v57  ;;  %v1631_v27 = vrot.slane %v1630_v49, 4  ;;  %v1635_v21 = vrot.slane %v1633_v22, 5 }
 0x197   : > { %v4410_v41 = vpop.permute.xlu1 %2192  ;;  %v4412_v52 = vpop.permute.xlu0 %2124  ;;  %v1924_v7 = vrot.slane %v1923_v48, 4  ;;  %v1599_v0 = vshll.u32 %v4325_v39, 16  ;;  %v2477_v18 = vsel %vm2473_vm5, %v2444_v36, %v4281_v34  ;;  %v4442_v54 = vcombine.low %v4434_v1, %v4436_v2 }
 0x198   : > { %v1321_v60 = vld [vmem:[#allocation2 + $0xd4] sm:$0x1]  ;;  %v1626_v39 = vsel %vm3572_vm13, %v1621_v44, %v1625_v51  ;;  %v1592_v15 = vrot.slane %v1590_v11, 4  ;;  %v1595_v48 = vrot.slane %v1593_v4, 5  ;;  %v1605_v19 = vrot.slane %v1603_v56, 4 }
 0x199   : > { %2243 = vrot.lane.b32.xlu1 %v3171_v45, %s3436_s12  ;;  %2171 = vrot.lane.b32.xlu0 %v4339_v25, %s3435_s11  ;;  %v1926_v23 = vshll.u32 %v1321_v60, 16  ;;  %v1938_v58 = vrot.slane %v1321_v60, 5  ;;  %4900 = vst [vmem:[#allocation5_spill] sm:$0xff] %v4442_v54  ;;  %v2510_v34 = vsel %vm2506_vm6, %v2477_v18, %v4228_v9  ;;  %v1636_v49 = vsel %vm3572_vm13, %v1631_v27, %v1635_v21 }
 0x19a   : > { %v1601_v22 = vrot.slane %v1599_v0, 5  ;;  %v2543_v9 = vsel %vm2539_vm8, %v2510_v34, %v4310_v3  ;;  %v3155_v31 = vcombine.low %v1626_v39, %v1636_v49  ;;  %v1596_v56 = vor.u32 %v1595_v48, %v1592_v15 }
 0x19b   : > { %v4429_v33 = vpop.permute.xlu1 %2044  ;;  %v2329_v38 = vpop.permute.xlu0 %2328  ;;  %v1928_v62 = vrot.slane %v1926_v23, 5  ;;  %v4450_v57 = vsel %vm3564_vm10, %v1937_v20, %v1938_v58  ;;  %v1609_v21 = vshll.u32 %v4362_v17, 16  ;;  %v4477_v23 = vld [vmem:[#allocation2 + $0x9c] sm:$0xf]  ;;  %v4479_v17 = vld [vmem:[#allocation2 + $0xa0] sm:$0xf] }
 0x19c   : > { %v1606_v27 = vor.u32 %v1605_v19, %v1601_v22  ;;  %v1597_v3 = vrot.slane %v1596_v56, 4  ;;  %v4488_v58 = vcombine.low %v4477_v23, %v4479_v17  ;;  %v1860_v15 = vrot.slane %v4436_v2, 5 }
 0x19d   : > { %2138 = vrot.lane.b32.xlu1 %v3170_v55, %s3433_s7  ;;  %2202 = vrot.lane.b32.xlu0 %v3152_v10, %s3438_s14  ;;  %v1929_v11 = vsel %vm3572_vm13, %v1924_v7, %v1928_v62  ;;  %v1611_v18 = vrot.slane %v1609_v21, 5  ;;  %v1662_v62 = vshrl.u32 %v4434_v1, 16  ;;  %v1665_v34 = vshll.u32 %v4434_v1, 16 }
 0x19e   : > { %v4463_v36 = vcombine.low %v1919_v37, %v1929_v11  ;;  %v1607_v60 = vrot.slane %v1606_v27, 4  ;;  %v1602_v48 = vsel %vm3572_vm13, %v1597_v3, %v1601_v22  ;;  %v1671_v49 = vshll.u32 %v4436_v2, 16 }
 0x19f   : > { %v4446_v24 = vpop.permute.xlu1 %2262  ;;  %v2226_v10 = vpop.permute.xlu0 %2225  ;;  %v1675_v22 = vshrl.u32 %v4436_v2, 16 }
 0x1a0   : > { %v1612_v19 = vsel %vm3572_vm13, %v1607_v60, %v1611_v18  ;;  %v1673_v3 = vrot.slane %v1671_v49, 5 }
 0x1a1   : > { %2177 = vrot.lane.b32.xlu1 %v4442_v54, %s3435_s11  ;;  %2346 = vrot.lane.b32.xlu0 %v3171_v45, %s3437_s13  ;;  %v1677_v60 = vrot.slane %v1675_v22, 4 }
 0x1a3   : > { %v2294_v44 = vpop.permute.xlu1 %2293  ;;  %v4467_v20 = vpop.permute.xlu0 %2264 }
 0x1a4   : > { %v2576_v4 = vsel %vm2572_vm9, %v2543_v9, %v2294_v44  ;;  %v3123_v44 = vrot.slane %v4434_v1, 9  ;;  %v1853_v9 = vrot.slane %v4479_v17, 5  ;;  %v1667_v1 = vrot.slane %v1665_v34, 5 }
 0x1a5   : > { %2208 = vrot.lane.b32.xlu1 %v3155_v31, %s3438_s14  ;;  %v2609_v0 = vsel %vm2605_vm11, %v2576_v4, %v2329_v38  ;;  %2140 = vrot.lane.b32.xlu0 %v3171_v45, %s3433_s7  ;;  %v2367_v38 = vsel %vm2358_vm2, %v3665_v32, %v4296_v43  ;;  %v1312_v32 = vld [vmem:[#allocation2 + $0xb0] sm:$0x1] }
 0x1a6   : > { %3327 = vmatmul.mubr.msk.bf16.vlgmr.msra.gmra.mxu1 %vm2681_vm12, %v2609_v0  ;;  %v2413_v43 = vsel %vm2407_vm3, %v2367_v38, %v4244_v29  ;;  %v1862_v29 = vrot.slane %v1860_v15, 4  ;;  %v1863_v21 = vrot.slane %v1312_v32, 5  ;;  %v1664_v0 = vrot.slane %v1662_v62, 4 }
 0x1a7   : > { %v2043_v37 = vpop.permute.xlu1 %2042  ;;  %v2296_v7 = vpop.permute.xlu0 %2295  ;;  %v2446_v11 = vsel %vm2440_vm4, %v2413_v43, %v4312_v12  ;;  %v4517_v12 = vld [vmem:[#allocation2 + $0xa4] sm:$0x1]  ;;  %v3122_v38 = vrot.slane %v4477_v23, 9  ;;  %v1855_v43 = vrot.slane %v1853_v9, 4 }
 0x1a8   : > { %v2370_v34 = vsel %vm2358_vm2, %v3799_v61, %v2043_v37  ;;  %v1856_v22 = vrot.slane %v4517_v12, 5 }
 0x1a9   : > { %2060 = vrot.lane.b32.xlu1 %v3155_v31, %s3434_s8  ;;  %2344 = vrot.lane.b32.xlu0 %v3170_v55, %s3437_s13 }
 0x1ab   : > { %v4484_v45 = vpop.permute.xlu1 %2231  ;;  %v4490_v39 = vpop.permute.xlu0 %2159 }
 0x1ad   : > { %2278 = vrot.lane.b32.xlu1 %v4488_v58, %s3432_s6  ;;  %2241 = vrot.lane.b32.xlu0 %v3170_v55, %s3436_s12  ;;  %v3154_v55 = vcombine.low %v1602_v48, %v1612_v19 }
 0x1af   : > { %v4510_v4 = vpop.permute.xlu1 %2126  ;;  %v2191_v56 = vpop.permute.xlu0 %2190 }
 0x1b0   : > { %v2479_v27 = vsel %vm2473_vm5, %v2446_v11, %v2191_v56  ;;  %v1857_v11 = vsel %vm3564_vm10, %v1855_v43, %v1856_v22  ;;  %v1678_v56 = vor.u32 %v1677_v60, %v1673_v3 }
 0x1b1   : > { %2309 = vrot.lane.b32.xlu1 %v3154_v55, %s3439_s15  ;;  %v2512_v2 = vsel %vm2506_vm6, %v2479_v27, %v2226_v10  ;;  %2280 = vrot.lane.b32.xlu0 %v4442_v54, %s3432_s6  ;;  %v1861_v10 = vsel %vm3564_vm10, %v3123_v44, %v1860_v15  ;;  %v1668_v44 = vor.u32 %v1667_v1, %v1664_v0  ;;  %v1681_v27 = vshll.u32 %v1312_v32, 16 }
 0x1b2   : > { %v2545_v18 = vsel %vm2539_vm8, %v2512_v2, %v4287_v35  ;;  %v1864_v35 = vsel %vm3564_vm10, %v1862_v29, %v1863_v21  ;;  %v1641_v29 = vshll.u32 %v4477_v23, 16  ;;  %v1651_v32 = vshrl.u32 %v4479_v17, 16 }
 0x1b3   : > { %v4522_v48 = vpop.permute.xlu1 %2165  ;;  %v4524_v19 = vpop.permute.xlu0 %2334  ;;  %v2578_v62 = vsel %vm2572_vm9, %v2545_v18, %v2296_v7  ;;  %v2415_v7 = vsel %vm2407_vm3, %v2370_v34, %v4358_v53  ;;  %v3173_v61 = vcombine.low %v1861_v10, %v1864_v35  ;;  %v1669_v1 = vrot.slane %v1668_v44, 4 }
 0x1b4   : > { %v2611_v49 = vsel %vm2605_vm11, %v2578_v62, %v4379_v14  ;;  %v1854_v14 = vsel %vm3564_vm10, %v3122_v38, %v1853_v9  ;;  %v2448_v53 = vsel %vm2440_vm4, %v2415_v7, %v4261_v46  ;;  %v1647_v9 = vshll.u32 %v4479_v17, 16  ;;  %v4564_v38 = vld [vmem:[#allocation2 + $0xc0] sm:$0xf] }
 0x1b5   : > { %2058 = vrot.lane.b32.xlu1 %v3154_v55, %s3434_s8  ;;  %2311 = vrot.lane.b32.xlu0 %v3155_v31, %s3439_s15  ;;  %v1638_v31 = vshrl.u32 %v4477_v23, 16  ;;  %v3172_v2 = vcombine.low %v1854_v14, %v1857_v11  ;;  %v1679_v60 = vrot.slane %v1678_v56, 4  ;;  %v1683_v18 = vrot.slane %v1681_v27, 5  ;;  %v4566_v23 = vld [vmem:[#allocation2 + $0xc4] sm:$0xf] }
 0x1b6   : > { %3330 = vmatprep.mubr.msk.bf16.mxu1 %vm2681_vm12, %v2611_v49  ;;  %v2481_v46 = vsel %vm2473_vm5, %v2448_v53, %v4410_v41  ;;  %v1643_v10 = vrot.slane %v1641_v29, 5  ;;  %v1649_v43 = vrot.slane %v1647_v9, 5  ;;  %v4572_v17 = vcombine.low %v4564_v38, %v4566_v23 }
 0x1b7   : > { %v4541_v15 = vpop.permute.xlu1 %2196  ;;  %v4543_v37 = vpop.permute.xlu0 %2128  ;;  %v1640_v62 = vrot.slane %v1638_v31, 4  ;;  %v1653_v35 = vrot.slane %v1651_v32, 4  ;;  %v1674_v41 = vsel %vm3572_vm13, %v1669_v1, %v1673_v3  ;;  %v1684_v22 = vsel %vm3572_vm13, %v1679_v60, %v1683_v18  ;;  %v1318_v18 = vld [vmem:[#allocation2 + $0xc8] sm:$0x1] }
 0x1b8   : > { %v4587_v11 = vcombine.low %v1674_v41, %v1684_v22  ;;  %v1657_v27 = vshll.u32 %v4517_v12, 16  ;;  %v1313_v12 = vld [vmem:[#allocation2 + $0xb4] sm:$0xf]  ;;  %v1901_v1 = vrot.slane %v4566_v23, 5  ;;  %v1873_v60 = vshrl.u32 %v4564_v38, 16 }
 0x1b9   : > { %2247 = vrot.lane.b32.xlu1 %v3173_v61, %s3436_s12  ;;  %2175 = vrot.lane.b32.xlu0 %v4488_v58, %s3435_s11  ;;  %v1644_v56 = vor.u32 %v1643_v10, %v1640_v62  ;;  %v1654_v3 = vor.u32 %v1653_v35, %v1649_v43  ;;  %v1886_v62 = vshrl.u32 %v4566_v23, 16  ;;  %v1882_v41 = vshll.u32 %v4566_v23, 16 }
 0x1ba   : > { %v1659_v32 = vrot.slane %v1657_v27, 5 }
 0x1bb   : > { %v4557_v21 = vpop.permute.xlu1 %2048  ;;  %v2333_v0 = vpop.permute.xlu0 %2332  ;;  %v1645_v29 = vrot.slane %v1644_v56, 4  ;;  %v1655_v9 = vrot.slane %v1654_v3, 4  ;;  %v1904_v56 = vrot.slane %v1318_v18, 5  ;;  %v1315_v3 = vld [vmem:[#allocation2 + $0xbc] sm:$0x1]  ;;  %v1884_v51 = vrot.slane %v1882_v41, 5 }
 0x1bc   : > { %v1888_v47 = vrot.slane %v1886_v62, 4 }
 0x1bd   : > { %2142 = vrot.lane.b32.xlu1 %v3172_v2, %s3433_s7  ;;  %2206 = vrot.lane.b32.xlu0 %v3154_v55, %s3438_s14  ;;  %v2514_v55 = vsel %vm2506_vm6, %v2481_v46, %v4335_v50  ;;  %v2373_v46 = vsel %vm2358_vm2, %v3746_v26, %v4429_v33  ;;  %v1650_v22 = vsel %vm3572_vm13, %v1645_v29, %v1649_v43  ;;  %v1689_v26 = vshll.u32 %v1313_v12, 16 }
 0x1be   : > { %v2547_v7 = vsel %vm2539_vm8, %v2514_v55, %v4446_v24  ;;  %v1903_v33 = vrot.slane %v1901_v1, 4  ;;  %v2417_v23 = vsel %vm2407_vm3, %v2373_v46, %v4412_v52  ;;  %v1875_v43 = vrot.slane %v1873_v60, 4 }
 0x1bf   : > { %v4568_v34 = vpop.permute.xlu1 %2266  ;;  %v4574_v49 = vpop.permute.xlu0 %2229  ;;  %v2450_v29 = vsel %vm2440_vm4, %v2417_v23, %v4490_v39  ;;  %v1870_v46 = vrot.slane %v1315_v3, 5 }
 0x1c0   : > { %v1905_v39 = vsel %vm3564_vm10, %v1903_v33, %v1904_v56 }
 0x1c1   : > { %2181 = vrot.lane.b32.xlu1 %v4572_v17, %s3435_s11  ;;  %2350 = vrot.lane.b32.xlu0 %v3173_v61, %s3437_s13 }
 0x1c3   : > { %v2298_v14 = vpop.permute.xlu1 %2297  ;;  %v4589_v44 = vpop.permute.xlu0 %2268 }
 0x1c4   : > { %v2580_v50 = vsel %vm2572_vm9, %v2547_v7, %v2298_v14  ;;  %v1660_v7 = vsel %vm3572_vm13, %v1655_v9, %v1659_v32  ;;  %v3125_v14 = vrot.slane %v4564_v38, 9 }
 0x1c5   : > { %2212 = vrot.lane.b32.xlu1 %v4587_v11, %s3438_s14  ;;  %v2613_v53 = vsel %vm2605_vm11, %v2580_v50, %v2333_v0  ;;  %2144 = vrot.lane.b32.xlu0 %v3173_v61, %s3433_s7  ;;  %v1876_v0 = vshll.u32 %v4564_v38, 16  ;;  %v1314_v61 = vld [vmem:[#allocation2 + $0xb8] sm:$0xf]  ;;  %v1686_v50 = vshrl.u32 %v1313_v12, 16  ;;  %v3156_v9 = vcombine.low %v1650_v22, %v1660_v7 }
 0x1c6   : > { %3331 = vmatmul.mubr.msk.bf16.gmra.mxu1 %vm2681_vm12, %v2613_v53  ;;  %v4610_v35 = vcombine.low %v1313_v12, %v1314_v61  ;;  %v1867_v27 = vrot.slane %v1314_v61, 5  ;;  %v1699_v54 = vshrl.u32 %v1314_v61, 16  ;;  %v1902_v5 = vsel %vm3564_vm10, %v3125_v14, %v1901_v1 }
 0x1c7   : > { %v2047_v24 = vpop.permute.xlu1 %2046  ;;  %v2300_v31 = vpop.permute.xlu0 %2299  ;;  %v1878_v53 = vrot.slane %v1876_v0, 5  ;;  %v1695_v52 = vshll.u32 %v1314_v61, 16  ;;  %v3124_v0 = vrot.slane %v1313_v12, 9  ;;  %v1892_v1 = vshll.u32 %v1318_v18, 16 }
 0x1c8   : > { %v1869_v41 = vrot.slane %v1867_v27, 4  ;;  %v1889_v14 = vor.u32 %v1888_v47, %v1884_v51  ;;  %v1688_v23 = vrot.slane %v1686_v50, 4  ;;  %v2376_v33 = vsel %vm2358_vm2, %v3888_v59, %v2047_v24 }
 0x1c9   : > { %2064 = vrot.lane.b32.xlu1 %v4587_v11, %s3434_s8  ;;  %2348 = vrot.lane.b32.xlu0 %v3172_v2, %s3437_s13  ;;  %v1879_v22 = vor.u32 %v1878_v53, %v1875_v43  ;;  %v1697_v56 = vrot.slane %v1695_v52, 5  ;;  %v3177_v18 = vcombine.low %v1902_v5, %v1905_v39  ;;  %v1868_v47 = vsel %vm3564_vm10, %v3124_v0, %v1867_v27 }
 0x1ca   : > { %v1894_v50 = vrot.slane %v1892_v1, 5  ;;  %v1705_v53 = vshll.u32 %v1315_v3, 16 }
 0x1cb   : > { %v4608_v10 = vpop.permute.xlu1 %2235  ;;  %v4612_v55 = vpop.permute.xlu0 %2163 }
 0x1cc   : > { %v1707_v52 = vrot.slane %v1705_v53, 5 }
 0x1cd   : > { %2282 = vrot.lane.b32.xlu1 %v4610_v35, %s3432_s6  ;;  %2245 = vrot.lane.b32.xlu0 %v3172_v2, %s3436_s12 }
 0x1cf   : > { %v4627_v38 = vpop.permute.xlu1 %2130  ;;  %v2195_v32 = vpop.permute.xlu0 %2194 }
 0x1d0   : > { %v2483_v2 = vsel %vm2473_vm5, %v2450_v29, %v2195_v32 }
 0x1d1   : > { %2313 = vrot.lane.b32.xlu1 %v3156_v9, %s3439_s15  ;;  %v2516_v60 = vsel %vm2506_vm6, %v2483_v2, %v4574_v49  ;;  %2284 = vrot.lane.b32.xlu0 %v4572_v17, %s3432_s6  ;;  %v1691_v17 = vrot.slane %v1689_v26, 5  ;;  %v1890_v26 = vrot.slane %v1889_v14, 4 }
 0x1d2   : > { %v2549_v62 = vsel %vm2539_vm8, %v2516_v60, %v4467_v20  ;;  %v1701_v20 = vrot.slane %v1699_v54, 4  ;;  %v1871_v54 = vsel %vm3564_vm10, %v1869_v41, %v1870_v46 }
 0x1d3   : > { %v4641_v61 = vpop.permute.xlu1 %2169  ;;  %v4643_v7 = vpop.permute.xlu0 %2338  ;;  %v2582_v49 = vsel %vm2572_vm9, %v2549_v62, %v2300_v31  ;;  %v2419_v31 = vsel %vm2407_vm3, %v2376_v33, %v4510_v4  ;;  %v3174_v27 = vcombine.low %v1868_v47, %v1871_v54  ;;  %v1895_v32 = vsel %vm3572_vm13, %v1890_v26, %v1894_v50 }
 0x1d4   : > { %v2615_v12 = vsel %vm2605_vm11, %v2582_v49, %v4524_v19  ;;  %v1880_v19 = vrot.slane %v1879_v22, 4  ;;  %v1702_v43 = vor.u32 %v1701_v20, %v1697_v56  ;;  %v2452_v5 = vsel %vm2440_vm4, %v2419_v31, %v4377_v8 }
 0x1d5   : > { %2062 = vrot.lane.b32.xlu1 %v3156_v9, %s3434_s8  ;;  %2315 = vrot.lane.b32.xlu0 %v4587_v11, %s3439_s15  ;;  %v1692_v11 = vor.u32 %v1691_v17, %v1688_v23  ;;  %v2485_v8 = vsel %vm2473_vm5, %v2452_v5, %v4541_v15 }
 0x1d6   : > { %3334 = vmatprep.mubr.msk.bf16.mxu1 %vm2681_vm12, %v2615_v12  ;;  %v1885_v63 = vsel %vm3572_vm13, %v1880_v19, %v1884_v51  ;;  %v1703_v3 = vrot.slane %v1702_v43, 4  ;;  %v2518_v46 = vsel %vm2506_vm6, %v2485_v8, %v4484_v45 }
 0x1d7   : > { %v4658_v59 = vpop.permute.xlu1 %2200  ;;  %v4660_v24 = vpop.permute.xlu0 %2132  ;;  %v1693_v2 = vrot.slane %v1692_v11, 4  ;;  %v3176_v39 = vcombine.low %v1885_v63, %v1895_v32 }
 0x1d8   : > { %v1708_v62 = vsel %vm3572_vm13, %v1703_v3, %v1707_v52 }
 0x1d9   : > { %2251 = vrot.lane.b32.xlu1 %v3177_v18, %s3436_s12  ;;  %2179 = vrot.lane.b32.xlu0 %v4610_v35, %s3435_s11  ;;  %v1698_v51 = vsel %vm3572_vm13, %v1693_v2, %v1697_v56 }
 0x1da   : > { %v3158_v41 = vcombine.low %v1698_v51, %v1708_v62 }
 0x1db   : > { %v4669_v4 = vpop.permute.xlu1 %2052  ;;  %v2337_v29 = vpop.permute.xlu0 %2336 }
 0x1dd   : > { %2146 = vrot.lane.b32.xlu1 %v3174_v27, %s3433_s7  ;;  %2210 = vrot.lane.b32.xlu0 %v3156_v9, %s3438_s14  ;;  %v2551_v9 = vsel %vm2539_vm8, %v2518_v46, %v4568_v34  ;;  %v2379_v34 = vsel %vm2358_vm2, %v3853_v40, %v4557_v21  ;;  %v4901_v40 = vcombine.low %v4403_v30, %v4450_v57  ;;  %s3205_s7 = sshll.u32 %s4908_s19, 4 }
 0x1de   : > { %v2421_v17 = vsel %vm2407_vm3, %v2379_v34, %v4543_v37  ;;  %s4860_s10 = scalar_lea.vmem %s4880_s5, %s3205_s7 }
 0x1df   : > { %v2271_v60 = vpop.permute.xlu1 %2270  ;;  %v2234_v0 = vpop.permute.xlu0 %2233  ;;  %v2454_v33 = vsel %vm2440_vm4, %v2421_v17, %v4612_v55 }
 0x1e1   : > { %2216 = vrot.lane.b32.xlu1 %v3176_v39, %s3438_s14  ;;  %2352 = vrot.lane.b32.xlu0 %v3174_v27, %s3437_s13 }
 0x1e3   : > { %v2302_v15 = vpop.permute.xlu1 %2301  ;;  %v2273_v22 = vpop.permute.xlu0 %2272 }
 0x1e4   : > { %v2584_v1 = vsel %vm2572_vm9, %v2551_v9, %v2302_v15 }
 0x1e5   : > { %2317 = vrot.lane.b32.xlu1 %v3158_v41, %s3439_s15  ;;  %v2617_v45 = vsel %vm2605_vm11, %v2584_v1, %v2337_v29  ;;  %2249 = vrot.lane.b32.xlu0 %v3174_v27, %s3436_s12 }
 0x1e6   : > { %3335 = vmatmul.mubr.msk.bf16.gmra.mxu1 %vm2681_vm12, %v2617_v45 }
 0x1e7   : > { %v2051_v6 = vpop.permute.xlu1 %2050  ;;  %v2304_v49 = vpop.permute.xlu0 %2303 }
 0x1e8   : > { %v2382_v31 = vsel %vm2358_vm2, %v4022_v28, %v2051_v6 }
 0x1e9   : > { %2066 = vrot.lane.b32.xlu1 %v3158_v41, %s3434_s8  ;;  %2319 = vrot.lane.b32.xlu0 %v3176_v39, %s3439_s15  ;;  %v2423_v30 = vsel %vm2407_vm3, %v2382_v31, %v4627_v38 }
 0x1eb   : > { %v4699_v14 = vpop.permute.xlu1 %2239  ;;  %v2168_v23 = vpop.permute.xlu0 %2167 }
 0x1ed   : > { %2321 = vrot.lane.b32.xlu1 %v4463_v36, %s3439_s15  ;;  %2214 = vrot.lane.b32.xlu0 %v3158_v41, %s3438_s14 }
 0x1ef   : > { %v2135_v12 = vpop.permute.xlu1 %2134  ;;  %v2199_v56 = vpop.permute.xlu0 %2198 }
 0x1f0   : > { %v2487_v20 = vsel %vm2473_vm5, %v2454_v33, %v2199_v56 }
 0x1f1   : > { %2356 = vrot.lane.b32.xlu1 %v4901_v40, %s3437_s13  ;;  %v2520_v21 = vsel %vm2506_vm6, %v2487_v20, %v2234_v0  ;;  %2354 = vrot.lane.b32.xlu0 %v3177_v18, %s3437_s13 }
 0x1f2   : > { %v2553_v36 = vsel %vm2539_vm8, %v2520_v21, %v4589_v44  ;;  %v2456_v44 = vsel %vm2440_vm4, %v2423_v30, %v4522_v48 }
 0x1f3   : > { %v4717_v37 = vpop.permute.xlu1 %2173  ;;  %v2343_v47 = vpop.permute.xlu0 %2342  ;;  %v2586_v55 = vsel %vm2572_vm9, %v2553_v36, %v2304_v49  ;;  %v2489_v26 = vsel %vm2473_vm5, %v2456_v44, %v4658_v59  ;;  %v2385_v59 = vsel %vm2358_vm2, %v3967_v13, %v4669_v4 }
 0x1f4   : > { %v2619_v54 = vsel %vm2605_vm11, %v2586_v55, %v4643_v7  ;;  %v2522_v7 = vsel %vm2506_vm6, %v2489_v26, %v4608_v10  ;;  %v2425_v10 = vsel %vm2407_vm3, %v2385_v59, %v4660_v24 }
 0x1f5   : > { %3338 = vmatprep.mubr.msk.bf16.mxu1 %vm2681_vm12, %v2619_v54  ;;  %v2555_v43 = vsel %vm2539_vm8, %v2522_v7, %v2271_v60  ;;  %v2458_v2 = vsel %vm2440_vm4, %v2425_v10, %v2168_v23 }
 0x1f7   : > { %v2205_v57 = vpop.permute.xlu1 %2204  ;;  %v2137_v18 = vpop.permute.xlu0 %2136 }
 0x1fb   : > { %v2057_v19 = vpop.permute.xlu1 %2056  ;;  %v2341_v50 = vpop.permute.xlu0 %2340 }
 0x1fc   : > { %v2391_v56 = vsel %vm2358_vm2, %v4116_v42, %v2057_v19 }
 0x1fd   : > { %v2429_v21 = vsel %vm2407_vm3, %v2391_v56, %v2137_v18 }
 0x1ff   : > { %v2275_v11 = vpop.permute.xlu1 %2274  ;;  %v2238_v28 = vpop.permute.xlu0 %2237 }
 0x203   : > { %v2306_v53 = vpop.permute.xlu1 %2305  ;;  %v2277_v5 = vpop.permute.xlu0 %2276 }
 0x204   : > { %v2588_v38 = vsel %vm2572_vm9, %v2555_v43, %v2306_v53 }
 0x205   : > { %v2621_v27 = vsel %vm2605_vm11, %v2588_v38, %v2341_v50 }
 0x206   : > { %3339 = vmatmul.mubr.msk.bf16.gmra.mxu1 %vm2681_vm12, %v2621_v27 }
 0x207   : > { %v2055_v48 = vpop.permute.xlu1 %2054  ;;  %v2308_v29 = vpop.permute.xlu0 %2307 }
 0x208   : > { %v2388_v4 = vsel %vm2358_vm2, %v4184_v16, %v2055_v48 }
 0x209   : > { %v2427_v51 = vsel %vm2407_vm3, %v2388_v4, %v2135_v12 }
 0x20a   : > { %v2460_v15 = vsel %vm2440_vm4, %v2427_v51, %v4641_v61 }
 0x20b   : > { %v2244_v63 = vpop.permute.xlu1 %2243  ;;  %v2172_v32 = vpop.permute.xlu0 %2171  ;;  %v2493_v1 = vsel %vm2473_vm5, %v2460_v15, %v2205_v57 }
 0x20c   : > { %v2526_v16 = vsel %vm2506_vm6, %v2493_v1, %v4699_v14  ;;  %v2462_v14 = vsel %vm2440_vm4, %v2429_v21, %v2172_v32 }
 0x20d   : > { %v2559_v49 = vsel %vm2539_vm8, %v2526_v16, %v2275_v11 }
 0x20f   : > { %v2139_v3 = vpop.permute.xlu1 %2138  ;;  %v2203_v52 = vpop.permute.xlu0 %2202 }
 0x210   : > { %v2491_v8 = vsel %vm2473_vm5, %v2458_v2, %v2203_v52  ;;  %v4902_v2 = vld [vmem:[#allocation4_spill] sm:$0xff] }
 0x211   : > { %v2524_v60 = vsel %vm2506_vm6, %v2491_v8, %v2238_v28 }
 0x212   : > { %v2557_v39 = vsel %vm2539_vm8, %v2524_v60, %v2273_v22 }
 0x213   : > { %v4746_v0 = vpop.permute.xlu1 %2177  ;;  %v2347_v46 = vpop.permute.xlu0 %2346  ;;  %v2590_v13 = vsel %vm2572_vm9, %v2557_v39, %v2308_v29 }
 0x214   : > { %v2623_v24 = vsel %vm2605_vm11, %v2590_v13, %v2343_v47 }
 0x215   : > { %3342 = vmatprep.mubr.msk.bf16.mxu1 %vm2681_vm12, %v2623_v24 }
 0x217   : > { %v2209_v62 = vpop.permute.xlu1 %2208  ;;  %v2141_v9 = vpop.permute.xlu0 %2140 }
 0x21b   : > { %v2061_v41 = vpop.permute.xlu1 %2060  ;;  %v2345_v22 = vpop.permute.xlu0 %2344 }
 0x21f   : > { %v2279_v45 = vpop.permute.xlu1 %2278  ;;  %v2242_v6 = vpop.permute.xlu0 %2241 }
 0x223   : > { %v2310_v34 = vpop.permute.xlu1 %2309  ;;  %v2281_v23 = vpop.permute.xlu0 %2280 }
 0x224   : > { %v2592_v17 = vsel %vm2572_vm9, %v2559_v49, %v2310_v34  ;;  %v4903_v34 = vld [vmem:[#allocation5_spill] sm:$0xff] }
 0x225   : > { %v2625_v33 = vsel %vm2605_vm11, %v2592_v17, %v2345_v22 }
 0x226   : > { %3343 = vmatmul.mubr.msk.bf16.gmra.mxu1 %vm2681_vm12, %v2625_v33 }
 0x227   : > { %v2059_v61 = vpop.permute.xlu1 %2058  ;;  %v2312_v12 = vpop.permute.xlu0 %2311 }
 0x228   : > { %v2394_v42 = vsel %vm2358_vm2, %v4339_v25, %v2059_v61 }
 0x229   : > { %v2431_v18 = vsel %vm2407_vm3, %v2394_v42, %v2139_v3  ;;  %v2397_v3 = vsel %vm2358_vm2, %v4902_v2, %v2061_v41 }
 0x22a   : > { %v2464_v11 = vsel %vm2440_vm4, %v2431_v18, %v4717_v37  ;;  %v2433_v60 = vsel %vm2407_vm3, %v2397_v3, %v2141_v9 }
 0x22b   : > { %v2248_v20 = vpop.permute.xlu1 %2247  ;;  %v2176_v40 = vpop.permute.xlu0 %2175  ;;  %v2497_v43 = vsel %vm2473_vm5, %v2464_v11, %v2209_v62  ;;  %v4829_v11 = vld [vmem:[%s4879_s4] ss:$0 sm:$0xff] }
 0x22c   : > { %v2530_v38 = vsel %vm2506_vm6, %v2497_v43, %v2244_v63 }
 0x22d   : > { %v2563_v25 = vsel %vm2539_vm8, %v2530_v38, %v2279_v45 }
 0x22f   : > { %v2143_v36 = vpop.permute.xlu1 %2142  ;;  %v2207_v47 = vpop.permute.xlu0 %2206 }
 0x230   : > { %v2495_v55 = vsel %vm2473_vm5, %v2462_v14, %v2207_v47 }
 0x231   : > { %v2528_v31 = vsel %vm2506_vm6, %v2495_v55, %v2242_v6 }
 0x232   : > { %v2561_v54 = vsel %vm2539_vm8, %v2528_v31, %v2277_v5  ;;  %v4904_v31 = vld [vmem:[#allocation3_spill] sm:$0xff] }
 0x233   : > { %v2182_v30 = vpop.permute.xlu1 %2181  ;;  %v2351_v57 = vpop.permute.xlu0 %2350  ;;  %v2594_v44 = vsel %vm2572_vm9, %v2561_v54, %v2312_v12 }
 0x234   : > { %v2627_v19 = vsel %vm2605_vm11, %v2594_v44, %v2347_v46  ;;  %v2466_v46 = vsel %vm2440_vm4, %v2433_v60, %v2176_v40 }
 0x235   : > { %3346 = vmatprep.mubr.msk.bf16.mxu1 %vm2681_vm12, %v2627_v19 }
 0x237   : > { %v2213_v50 = vpop.permute.xlu1 %2212  ;;  %v2145_v26 = vpop.permute.xlu0 %2144 }
 0x23b   : > { %v2065_v28 = vpop.permute.xlu1 %2064  ;;  %v2349_v7 = vpop.permute.xlu0 %2348 }
 0x23f   : > { %v2283_v53 = vpop.permute.xlu1 %2282  ;;  %v2246_v5 = vpop.permute.xlu0 %2245 }
 0x243   : > { %v2314_v27 = vpop.permute.xlu1 %2313  ;;  %v2285_v48 = vpop.permute.xlu0 %2284 }
 0x244   : > { %v2596_v29 = vsel %vm2572_vm9, %v2563_v25, %v2314_v27 }
 0x245   : > { %v2629_v59 = vsel %vm2605_vm11, %v2596_v29, %v2349_v7 }
 0x246   : > { %3347 = vmatmul.mubr.msk.bf16.gmra.mxu1 %vm2681_vm12, %v2629_v59 }
 0x247   : > { %v2063_v32 = vpop.permute.xlu1 %2062  ;;  %v2316_v37 = vpop.permute.xlu0 %2315 }
 0x248   : > { %v2400_v10 = vsel %vm2358_vm2, %v4488_v58, %v2063_v32 }
 0x249   : > { %v2435_v63 = vsel %vm2407_vm3, %v2400_v10, %v2143_v36 }
 0x24a   : > { %v2468_v39 = vsel %vm2440_vm4, %v2435_v63, %v4746_v0 }
 0x24b   : > { %v2252_v52 = vpop.permute.xlu1 %2251  ;;  %v2180_v8 = vpop.permute.xlu0 %2179  ;;  %v2501_v51 = vsel %vm2473_vm5, %v2468_v39, %v2213_v50 }
 0x24c   : > { %v2534_v9 = vsel %vm2506_vm6, %v2501_v51, %v2248_v20 }
 0x24d   : > { %v2567_v1 = vsel %vm2539_vm8, %v2534_v9, %v2283_v53 }
 0x24f   : > { %v2147_v13 = vpop.permute.xlu1 %2146  ;;  %v2211_v4 = vpop.permute.xlu0 %2210 }
 0x250   : > { %v2499_v24 = vsel %vm2473_vm5, %v2466_v46, %v2211_v4 }
 0x251   : > { %v2532_v58 = vsel %vm2506_vm6, %v2499_v24, %v2246_v5 }
 0x252   : > { %v2565_v62 = vsel %vm2539_vm8, %v2532_v58, %v2281_v23  ;;  %v2403_v23 = vsel %vm2358_vm2, %v4903_v34, %v2065_v28 }
 0x253   : > { %v2217_v15 = vpop.permute.xlu1 %2216  ;;  %v2353_v41 = vpop.permute.xlu0 %2352  ;;  %v2598_v22 = vsel %vm2572_vm9, %v2565_v62, %v2316_v37  ;;  %v2437_v56 = vsel %vm2407_vm3, %v2403_v23, %v2145_v26 }
 0x254   : > { %v2631_v0 = vsel %vm2605_vm11, %v2598_v22, %v2351_v57  ;;  %v2470_v40 = vsel %vm2440_vm4, %v2437_v56, %v2180_v8 }
 0x255   : > { %3350 = vmatprep.mubr.msk.bf16.mxu1 %vm2681_vm12, %v2631_v0 }
 0x257   : > { %v2318_v45 = vpop.permute.xlu1 %2317  ;;  %v2250_v6 = vpop.permute.xlu0 %2249 }
 0x258   : > { %v2600_v16 = vsel %vm2572_vm9, %v2567_v1, %v2318_v45 }
 0x259   : > { %v2633_v49 = vsel %vm2605_vm11, %v2600_v16, %v2353_v41 }
 0x25a   : > { %3351 = vmatmul.mubr.msk.bf16.gmra.mxu1 %vm2681_vm12, %v2633_v49 }
 0x25b   : > { %v2067_v17 = vpop.permute.xlu1 %2066  ;;  %v2320_v33 = vpop.permute.xlu0 %2319 }
 0x25c   : > { %v2406_v61 = vsel %vm2358_vm2, %v4610_v35, %v2067_v17 }
 0x25d   : > { %v2439_v12 = vsel %vm2407_vm3, %v2406_v61, %v2147_v13 }
 0x25e   : > { %v2472_v20 = vsel %vm2440_vm4, %v2439_v12, %v2182_v30 }
 0x25f   : > { %v2505_v21 = vsel %vm2473_vm5, %v2472_v20, %v2217_v15  ;;  %v2322_v14 = vpop.permute.xlu1 %2321  ;;  %v2215_v36 = vpop.permute.xlu0 %2214 }
 0x260   : > { %v2538_v47 = vsel %vm2506_vm6, %v2505_v21, %v2252_v52  ;;  %v2503_v55 = vsel %vm2473_vm5, %v2470_v40, %v2215_v36 }
 0x261   : > { %v2571_v54 = vsel %vm2539_vm8, %v2538_v47, %v4904_v31  ;;  %v2536_v35 = vsel %vm2506_vm6, %v2503_v55, %v2250_v6 }
 0x262   : > { %v2604_v57 = vsel %vm2572_vm9, %v2571_v54, %v2322_v14  ;;  %v2569_v44 = vsel %vm2539_vm8, %v2536_v35, %v2285_v48 }
 0x263   : > { %v2357_v30 = vpop.permute.xlu1 %2356  ;;  %v2602_v42 = vsel %vm2572_vm9, %v2569_v44, %v2320_v33  ;;  %v2355_v19 = vpop.permute.xlu0 %2354 }
 0x264   : > { %v2635_v18 = vsel %vm2605_vm11, %v2602_v42, %v2355_v19  ;;  %v2637_v50 = vsel %vm2605_vm11, %v2604_v57, %v2357_v30 }
 0x265   : > { %3354 = vmatprep.mubr.msk.bf16.mxu1 %vm2681_vm12, %v2635_v18 }
 0x266   : > { %v3328_v26 = vpop.f32.mrf.mxu1  ;;  %3355 = vmatmul.mubr.msk.bf16.gmra.mxu1 %vm2681_vm12, %v2637_v50 }
 0x267   : > { %v2761_v25 = vadd.f32 %v3328_v26, %v4829_v11 }
 0x268   : > { %v2752_v28 = vpop.f32.mrf.mxu1 }
 0x269   : > { %v2753_v7 = vadd.f32 %v4829_v11, %v2752_v28  ;;  %v2881_v48 = vmax.f32 %v2761_v25, 0.0 }
 0x26a   : > { %v3329_v43 = vpop.f32.mrf.mxu1 }
 0x26b   : > { %v2879_v53 = vmax.f32 %v2753_v7, 0.0  ;;  %v2764_v29 = vadd.f32 %v3329_v43, %v4829_v11 }
 0x26c   : > { %v2755_v5 = vpop.f32.mrf.mxu1 }
 0x26d   : > { %v2756_v38 = vadd.f32 %v4829_v11, %v2755_v5  ;;  %2911 = vxpose.xlu0.b32.start [1/16] (narrow) %v2879_v53, 8  ;;  %v2882_v59 = vmax.f32 %v2764_v29, 0.0 }
 0x26f   : > { %v2880_v27 = vmax.f32 %v2756_v38, 0.0 }
 0x271   : > { %2912 = vxpose.xlu0.b32.cont [2/16] (narrow) %v2880_v27, 8 }
 0x275   : > { %2913 = vxpose.xlu0.b32.cont [3/16] (narrow) %v2881_v48, 8 }
 0x279   : > { %2914 = vxpose.xlu0.b32.cont [4/16] (narrow) %v2882_v59, 8 }
 0x286   : > { %v3332_v32 = vpop.f32.mrf.mxu1 }
 0x287   : > { %v2777_v8 = vadd.f32 %v3332_v32, %v4829_v11 }
 0x288   : > { %v2768_v37 = vpop.f32.mrf.mxu1 }
 0x289   : > { %v2769_v10 = vadd.f32 %v4829_v11, %v2768_v37  ;;  %v2885_v39 = vmax.f32 %v2777_v8, 0.0 }
 0x28a   : > { %v3333_v2 = vpop.f32.mrf.mxu1 }
 0x28b   : > { %v2883_v3 = vmax.f32 %v2769_v10, 0.0  ;;  %v2780_v46 = vadd.f32 %v3333_v2, %v4829_v11 }
 0x28c   : > { %v2771_v63 = vpop.f32.mrf.mxu1 }
 0x28d   : > { %v2772_v52 = vadd.f32 %v4829_v11, %v2771_v63  ;;  %2915 = vxpose.xlu0.b32.cont [5/16] (narrow) %v2883_v3, 8  ;;  %v2886_v13 = vmax.f32 %v2780_v46, 0.0 }
 0x28f   : > { %v2884_v60 = vmax.f32 %v2772_v52, 0.0 }
 0x291   : > { %2916 = vxpose.xlu0.b32.cont [6/16] (narrow) %v2884_v60, 8 }
 0x295   : > { %2917 = vxpose.xlu0.b32.cont [7/16] (narrow) %v2885_v39, 8 }
 0x299   : > { %2918 = vxpose.xlu0.b32.cont [8/16] (narrow) %v2886_v13, 8 }
 0x2a6   : > { %v3336_v4 = vpop.f32.mrf.mxu1 }
 0x2a7   : > { %v2793_v22 = vadd.f32 %v3336_v4, %v4829_v11 }
 0x2a8   : > { %v2784_v24 = vpop.f32.mrf.mxu1 }
 0x2a9   : > { %v2785_v58 = vadd.f32 %v4829_v11, %v2784_v24  ;;  %v2889_v0 = vmax.f32 %v2793_v22, 0.0 }
 0x2aa   : > { %v3337_v51 = vpop.f32.mrf.mxu1 }
 0x2ab   : > { %v2887_v62 = vmax.f32 %v2785_v58, 0.0  ;;  %v2796_v1 = vadd.f32 %v3337_v51, %v4829_v11 }
 0x2ac   : > { %v2787_v15 = vpop.f32.mrf.mxu1 }
 0x2ad   : > { %v2788_v41 = vadd.f32 %v4829_v11, %v2787_v15  ;;  %2919 = vxpose.xlu0.b32.cont [9/16] (narrow) %v2887_v62, 8  ;;  %v2890_v45 = vmax.f32 %v2796_v1, 0.0 }
 0x2af   : > { %v2888_v9 = vmax.f32 %v2788_v41, 0.0 }
 0x2b1   : > { %2920 = vxpose.xlu0.b32.cont [10/16] (narrow) %v2888_v9, 8 }
 0x2b5   : > { %2921 = vxpose.xlu0.b32.cont [11/16] (narrow) %v2889_v0, 8 }
 0x2b9   : > { %2922 = vxpose.xlu0.b32.cont [12/16] (narrow) %v2890_v45, 8 }
 0x2c6   : > { %v3340_v6 = vpop.f32.mrf.mxu1 }
 0x2c7   : > { %v2809_v61 = vadd.f32 %v3340_v6, %v4829_v11 }
 0x2c8   : > { %v2800_v16 = vpop.f32.mrf.mxu1 }
 0x2c9   : > { %v2801_v49 = vadd.f32 %v4829_v11, %v2800_v16  ;;  %v2893_v56 = vmax.f32 %v2809_v61, 0.0 }
 0x2ca   : > { %v3341_v34 = vpop.f32.mrf.mxu1 }
 0x2cb   : > { %v2891_v23 = vmax.f32 %v2801_v49, 0.0  ;;  %v2812_v20 = vadd.f32 %v3341_v34, %v4829_v11 }
 0x2cc   : > { %v2803_v17 = vpop.f32.mrf.mxu1 }
 0x2cd   : > { %v2804_v33 = vadd.f32 %v4829_v11, %v2803_v17  ;;  %2923 = vxpose.xlu0.b32.cont [13/16] (narrow) %v2891_v23, 8  ;;  %v2894_v40 = vmax.f32 %v2812_v20, 0.0 }
 0x2cf   : > { %v2892_v12 = vmax.f32 %v2804_v33, 0.0 }
 0x2d1   : > { %2924 = vxpose.xlu0.b32.cont [14/16] (narrow) %v2892_v12, 8 }
 0x2d5   : > { %2925 = vxpose.xlu0.b32.cont [15/16] (narrow) %v2893_v56, 8 }
 0x2d9   : > { %2926 = vxpose.xlu0.b32.end [16/16] (narrow) %v2894_v40, 8 }
 0x2e6   : > { %v3344_v21 = vpop.f32.mrf.mxu1 }
 0x2e7   : > { %v2825_v35 = vadd.f32 %v3344_v21, %v4829_v11 }
 0x2e8   : > { %v2816_v14 = vpop.f32.mrf.mxu1 }
 0x2e9   : > { %v2817_v36 = vadd.f32 %v4829_v11, %v2816_v14  ;;  %v2897_v44 = vmax.f32 %v2825_v35, 0.0 }
 0x2ea   : > { %v3345_v47 = vpop.f32.mrf.mxu1 }
 0x2eb   : > { %v2895_v55 = vmax.f32 %v2817_v36, 0.0  ;;  %v2828_v30 = vadd.f32 %v3345_v47, %v4829_v11 }
 0x2ec   : > { %v2819_v31 = vpop.f32.mrf.mxu1 }
 0x2ed   : > { %v2820_v54 = vadd.f32 %v4829_v11, %v2819_v31  ;;  %2943 = vxpose.xlu1.b32.start [1/16] (narrow) %v2895_v55, 8  ;;  %v2898_v42 = vmax.f32 %v2828_v30, 0.0 }
 0x2ef   : > { %v2896_v57 = vmax.f32 %v2820_v54, 0.0 }
 0x2f1   : > { %2944 = vxpose.xlu1.b32.cont [2/16] (narrow) %v2896_v57, 8 }
 0x2f5   : > { %2945 = vxpose.xlu1.b32.cont [3/16] (narrow) %v2897_v44, 8 }
 0x2f9   : > { %2946 = vxpose.xlu1.b32.cont [4/16] (narrow) %v2898_v42, 8 }
 0x306   : > { %v3348_v19 = vpop.f32.mrf.mxu1 }
 0x307   : > { %v2841_v53 = vadd.f32 %v3348_v19, %v4829_v11 }
 0x308   : > { %v2832_v18 = vpop.f32.mrf.mxu1 }
 0x309   : > { %v2833_v50 = vadd.f32 %v4829_v11, %v2832_v18  ;;  %v2901_v38 = vmax.f32 %v2841_v53, 0.0 }
 0x30a   : > { %v3349_v26 = vpop.f32.mrf.mxu1 }
 0x30b   : > { %v2899_v28 = vmax.f32 %v2833_v50, 0.0  ;;  %v2844_v25 = vadd.f32 %v3349_v26, %v4829_v11 }
 0x30c   : > { %v2835_v7 = vpop.f32.mrf.mxu1 }
 0x30d   : > { %v2836_v43 = vadd.f32 %v4829_v11, %v2835_v7  ;;  %2947 = vxpose.xlu1.b32.cont [5/16] (narrow) %v2899_v28, 8  ;;  %v2902_v27 = vmax.f32 %v2844_v25, 0.0 }
 0x30f   : > { %v2900_v5 = vmax.f32 %v2836_v43, 0.0 }
 0x311   : > { %2948 = vxpose.xlu1.b32.cont [6/16] (narrow) %v2900_v5, 8 }
 0x315   : > { %2949 = vxpose.xlu1.b32.cont [7/16] (narrow) %v2901_v38, 8 }
 0x319   : > { %2950 = vxpose.xlu1.b32.cont [8/16] (narrow) %v2902_v27, 8  ;;  %v2927_v48 = vpop.trf.xlu0 }
 0x31a   : > { %v3352_v29 = vpop.f32.mrf.mxu1  ;;  %2975 = vst [vmem:[%s4860_s10] sm:$0xff] %v2927_v48 }
 0x31b   : > { %v2857_v63 = vadd.f32 %v3352_v29, %v4829_v11 }
 0x31c   : > { %v2848_v59 = vpop.f32.mrf.mxu1 }
 0x31d   : > { %v2849_v32 = vadd.f32 %v4829_v11, %v2848_v59  ;;  %v2905_v60 = vmax.f32 %v2857_v63, 0.0 }
 0x31e   : > { %v3353_v37 = vpop.f32.mrf.mxu1 }
 0x31f   : > { %v2903_v10 = vmax.f32 %v2849_v32, 0.0  ;;  %v2860_v39 = vadd.f32 %v3353_v37, %v4829_v11 }
 0x320   : > { %v2851_v2 = vpop.f32.mrf.mxu1 }
 0x321   : > { %v2852_v3 = vadd.f32 %v4829_v11, %v2851_v2  ;;  %2951 = vxpose.xlu1.b32.cont [9/16] (narrow) %v2903_v10, 8  ;;  %v2906_v24 = vmax.f32 %v2860_v39, 0.0 }
 0x323   : > { %v2904_v52 = vmax.f32 %v2852_v3, 0.0 }
 0x325   : > { %2952 = vxpose.xlu1.b32.cont [10/16] (narrow) %v2904_v52, 8 }
 0x326   : > { %v3356_v8 = vpop.f32.mrf.mxu1 }
 0x327   : > { %v2873_v41 = vadd.f32 %v3356_v8, %v4829_v11 }
 0x328   : > { %v2864_v46 = vpop.f32.mrf.mxu1 }
 0x329   : > { %2953 = vxpose.xlu1.b32.cont [11/16] (narrow) %v2905_v60, 8  ;;  %v2865_v13 = vadd.f32 %v4829_v11, %v2864_v46  ;;  %v2909_v22 = vmax.f32 %v2873_v41, 0.0 }
 0x32a   : > { %v3357_v4 = vpop.f32.mrf.mxu1 }
 0x32b   : > { %v2907_v51 = vmax.f32 %v2865_v13, 0.0  ;;  %v2876_v9 = vadd.f32 %v3357_v4, %v4829_v11 }
 0x32c   : > { %v2867_v58 = vpop.f32.mrf.mxu1 }
 0x32d   : > { %2954 = vxpose.xlu1.b32.cont [12/16] (narrow) %v2906_v24, 8  ;;  %v2868_v62 = vadd.f32 %v4829_v11, %v2867_v58  ;;  %v2910_v0 = vmax.f32 %v2876_v9, 0.0 }
 0x32f   : > { %v2908_v15 = vmax.f32 %v2868_v62, 0.0 }
 0x331   : > { %2955 = vxpose.xlu1.b32.cont [13/16] (narrow) %v2907_v51, 8 }
 0x335   : > { %2956 = vxpose.xlu1.b32.cont [14/16] (narrow) %v2908_v15, 8 }
 0x339   : > { %2957 = vxpose.xlu1.b32.cont [15/16] (narrow) %v2909_v22, 8 }
 0x33d   : > { %2958 = vxpose.xlu1.b32.end [16/16] (narrow) %v2910_v0, 8 }
 0x37d   : > { %v2959_v1 = vpop.trf.xlu1 }
 0x37e   : > { %2976 = vst [vmem:[%s4860_s10 + $0x8] sm:$0xff] %v2959_v1 }
 0x37f PF: > { %s15_s18 = sadd.s32 1, %s3429_s18  }
 0x380   : > { %p12_p5 = scmp.ge.s32.totalorder %s15_s18, 4  }
 0x382   :  { %14 = sbr.rel (!%p12_p5) target bundleno = 1 (0x1), region = 72 }

</bundles_post_ra>
